<compile_context>
chip_gen: v5e
topology: v5e:2x2
jax: 0.10.0
libtpu: 0.0.40
codegen_flags: <defaults>
</compile_context>

<pallas_src>
import functools

import jax
import jax.numpy as jnp
from jax.experimental import pallas as pl
from jax.experimental.pallas import tpu as pltpu

DIM_INP = 48
DIM_OUT = 8
NUM_CLASSES = 10


def net_head_kernel(xt_ref, wqkv_ref, bqkv_ref, wqkv2_ref, bqkv2_ref,
                    wfc2_ref, bfc2_ref, o_ref, *, dim_out, repeats):
    """One batch tile, feature-major layout (batch on the 128-lane axis).

    xt_ref:    (48, TB) activations^T
    wqkv_ref:  (24, 48) [Wq/scale ; Wk ; Wv]           (first block only)
    bqkv_ref:  (24, 1)
    wqkv2_ref: (24, 8)  Wqkv @ Wo                        (blocks 2..R)
    bqkv2_ref: (24, 1)  Wqkv @ bo + bqkv
    wfc2_ref:  (10, 8)  Wfc @ Wo                         (final FC, Wo folded)
    bfc2_ref:  (10, 1)  Wfc @ bo + bfc
    o_ref:     (10, TB) log-probabilities^T
    """
    d = dim_out

    # First block: the only K=48 matmul, (24,48)@(48,TB) on the MXU.
    qkv = jnp.dot(wqkv_ref[...], xt_ref[...],
                  preferred_element_type=jnp.float32) + bqkv_ref[...]        # (24, TB)

    wqkv2 = wqkv2_ref[...]                                                   # (24, 8)
    bqkv2 = bqkv2_ref[...]                                                   # (24, 1)

    z = None
    for r in range(repeats):
        if r > 0:
            # Wo/bo folded into the next block's QKV: (24,8)@(8,TB).
            qkv = jnp.dot(wqkv2, z, preferred_element_type=jnp.float32) + bqkv2

        q = qkv[0 * d:1 * d, :]        # (8, TB), 1/sqrt(d) pre-folded into the q rows
        k = qkv[1 * d:2 * d, :]        # (8, TB)
        v = qkv[2 * d:3 * d, :]        # (8, TB)

        # Exact closed-form row max of s[i,j,b] = q[i,b]*k[j,b]:
        #   max_j s = q*kmax if q>=0 else q*kmin
        kmax = jnp.max(k, axis=0, keepdims=True)                             # (1, TB)
        kmin = jnp.min(k, axis=0, keepdims=True)                             # (1, TB)
        m = jnp.where(q >= 0.0, q * kmax, q * kmin)                          # (8, TB)

        # Single pass over the query rows i; never materializes an (8,8,TB) tensor.
        #   z[j,b] = sum_i (v[i,b]/denom[i,b]) * exp(q[i,b]*k[j,b] - m[i,b])
        z = jnp.zeros_like(q)                                                # (8, TB)
        for i in range(d):
            e_i = jnp.exp(q[i:i + 1, :] * k - m[i:i + 1, :])                 # (8, TB)
            denom_i = jnp.sum(e_i, axis=0, keepdims=True)                    # (1, TB)
            scale_i = v[i:i + 1, :] * pl.reciprocal(denom_i, approx=True)    # (1, TB)
            z = z + scale_i * e_i                                            # (8, TB)

    # Final FC (Wo/bo folded) + log_softmax over the 10 classes.
    logits = jnp.dot(wfc2_ref[...], z,
                     preferred_element_type=jnp.float32) + bfc2_ref[...]     # (10, TB)
    logits = logits - jnp.max(logits, axis=0, keepdims=True)
    lse = jnp.log(jnp.sum(jnp.exp(logits), axis=0, keepdims=True))
    o_ref[...] = logits - lse                                                # (10, TB)


def net_head_forward(x, params, *, repeats=4, tb_max=1024, io_dtype=jnp.float32):
    """x: (B, 48) float32 post-GAP features.  Returns (B, 10) log-probs."""
    wq, bq, wk, bk, wv, bv, wo, bo, wfc, bfc = params
    B = x.shape[0]

    # One-time param prep: fuse QKV, fold 1/sqrt(dim_out) into the q rows, and fold the
    # Ultimus output projection (Wo, bo) into the next block's QKV and the final FC.
    inv_scale = 1.0 / (DIM_OUT ** 0.5)
    w_qkv = jnp.concatenate([wq * inv_scale, wk, wv], axis=0)                # (24, 48)
    b_qkv = jnp.concatenate([bq * inv_scale, bk, bv], axis=0)[:, None]       # (24, 1)
    w_qkv2 = w_qkv @ wo                                                      # (24, 8)
    b_qkv2 = w_qkv @ bo[:, None] + b_qkv                                     # (24, 1)
    w_fc2 = wfc @ wo                                                         # (10, 8)
    b_fc2 = (wfc @ bo + bfc)[:, None]                                        # (10, 1)

    def _round_up(a, m):
        return ((a + m - 1) // m) * m

    # Lane-dense feature-major layout: batch on the 128-lane axis.
    # Target >= 4 grid steps (so v7x can shard the "parallel" batch axis across its two
    # TensorCores) while letting tiles grow up to tb_max for large batches (v5e/v6e).
    Bp = _round_up(max(B, 1), 128)
    tb = max(128, min(tb_max, _round_up(-(-Bp // 4), 128)))
    Bp = _round_up(Bp, tb)

    xt = jnp.transpose(x)                                                    # (48, B)
    if Bp != B:
        xt = jnp.pad(xt, ((0, 0), (0, Bp - B)))                              # zero cols, sliced off later
    xt = xt.astype(io_dtype)
    w_qkv_io = w_qkv.astype(io_dtype)

    def rep_spec(arr):
        nd = arr.ndim
        return pl.BlockSpec(arr.shape, lambda b, _nd=nd: (0,) * _nd)

    kernel = functools.partial(net_head_kernel, dim_out=DIM_OUT, repeats=repeats)

    out_t = pl.pallas_call(
        kernel,
        out_shape=jax.ShapeDtypeStruct((NUM_CLASSES, Bp), jnp.float32),
        grid=(Bp // tb,),
        in_specs=[
            pl.BlockSpec((DIM_INP, tb), lambda b: (0, b)),   # x^T tile (lane-dense batch)
            rep_spec(w_qkv_io), rep_spec(b_qkv),
            rep_spec(w_qkv2), rep_spec(b_qkv2),
            rep_spec(w_fc2), rep_spec(b_fc2),
        ],
        out_specs=pl.BlockSpec((NUM_CLASSES, tb), lambda b: (0, b)),
        compiler_params=pltpu.CompilerParams(
            dimension_semantics=("parallel",),
            vmem_limit_bytes=32 * 1024 * 1024,
        ),
    )(xt, w_qkv_io, b_qkv, w_qkv2, b_qkv2, w_fc2, b_fc2)

    return jnp.transpose(out_t)[:B]                                          # (B, 10)


def net_head_ref(x, params, *, repeats=4):
    """Pure-JAX reference matching the PyTorch head exactly."""
    wq, bq, wk, bk, wv, bv, wo, bo, wfc, bfc = params
    scale = DIM_OUT ** 0.5
    for _ in range(repeats):
        q = x @ wq.T + bq
        k = x @ wk.T + bk
        v = x @ wv.T + bv
        am = (q[:, :, None] * k[:, None, :]) / scale        # (B, d, d)
        am = jax.nn.softmax(am, axis=-1)
        z = jnp.einsum("bi,bij->bj", v, am)                 # (B, d)
        x = z @ wo.T + bo                                   # (B, 48)
    logits = x @ wfc.T + bfc                                # (B, 10)
    return jax.nn.log_softmax(logits, axis=-1)


def init_params(key):
    """Deterministic nn.Linear-style init: U(-1/sqrt(fan_in), 1/sqrt(fan_in))."""
    ks = jax.random.split(key, 10)

    def lin(kw, kb, fan_in, fan_out):
        bound = 1.0 / (fan_in ** 0.5)
        w = jax.random.uniform(kw, (fan_out, fan_in), jnp.float32, -bound, bound)
        b = jax.random.uniform(kb, (fan_out,), jnp.float32, -bound, bound)
        return w, b

    wq, bq = lin(ks[0], ks[1], DIM_INP, DIM_OUT)
    wk, bk = lin(ks[2], ks[3], DIM_INP, DIM_OUT)
    wv, bv = lin(ks[4], ks[5], DIM_INP, DIM_OUT)
    wo, bo = lin(ks[6], ks[7], DIM_OUT, DIM_INP)
    wfc, bfc = lin(ks[8], ks[9], DIM_INP, NUM_CLASSES)
    return (wq, bq, wk, bk, wv, bv, wo, bo, wfc, bfc)


if __name__ == "__main__":
    key = jax.random.PRNGKey(0)
    k_x, k_p = jax.random.split(key)
    params = init_params(k_p)

    # Small batch (single grid step).
    B = 8
    x = jax.random.normal(k_x, (B, DIM_INP), jnp.float32)
    out = net_head_forward(x, params, repeats=4)
    out = jax.block_until_ready(out)
    ref = net_head_ref(x, params, repeats=4)
    assert out.shape == (B, NUM_CLASSES)
    assert bool(jnp.all(jnp.isfinite(out)))
    # approx reciprocal on the EUP introduces ~1e-4 relative error per softmax; allow slack.
    assert jnp.allclose(out, ref, atol=5e-3, rtol=5e-3), "mismatch vs reference (B=8)"

    # Non-multiple-of-128 batch exercising the multi-tile "parallel" grid + padding path.
    B2 = 300
    x2 = jax.random.normal(jax.random.PRNGKey(1), (B2, DIM_INP), jnp.float32)
    out2 = jax.block_until_ready(net_head_forward(x2, params, repeats=4))
    ref2 = net_head_ref(x2, params, repeats=4)
    assert out2.shape == (B2, NUM_CLASSES)
    assert jnp.allclose(out2, ref2, atol=5e-3, rtol=5e-3), "mismatch vs reference (B=300)"

    print("KERNEL_OK")
</pallas_src>

<mosaic_0001>
module attributes {stable_mosaic.version = 11 : i64} {
  func.func @net_head_kernel(%arg0: i32, %arg1: memref<48x128xf32, #tpu.memory_space<vmem>>, %arg2: memref<24x48xf32, #tpu.memory_space<vmem>>, %arg3: memref<24x1xf32, #tpu.memory_space<vmem>>, %arg4: memref<24x8xf32, #tpu.memory_space<vmem>>, %arg5: memref<24x1xf32, #tpu.memory_space<vmem>>, %arg6: memref<10x8xf32, #tpu.memory_space<vmem>>, %arg7: memref<10x1xf32, #tpu.memory_space<vmem>>, %arg8: memref<10x128xf32, #tpu.memory_space<vmem>>) attributes {dimension_semantics = [#tpu.dimension_semantics<parallel>], iteration_bounds = array<i64: 1>, scalar_prefetch = 0 : i64, scratch_operands = 0 : i64, tpu.core_type = #tpu.core_type<tc>, window_params = [{transform_indices = @transform_0, window_bounds = array<i64: 48, 128>}, {pipeline_mode = #tpu.pipeline_mode<synchronous>, transform_indices = @transform_1, window_bounds = array<i64: 24, 48>}, {pipeline_mode = #tpu.pipeline_mode<synchronous>, transform_indices = @transform_2, window_bounds = array<i64: 24, 1>}, {pipeline_mode = #tpu.pipeline_mode<synchronous>, transform_indices = @transform_3, window_bounds = array<i64: 24, 8>}, {pipeline_mode = #tpu.pipeline_mode<synchronous>, transform_indices = @transform_4, window_bounds = array<i64: 24, 1>}, {pipeline_mode = #tpu.pipeline_mode<synchronous>, transform_indices = @transform_5, window_bounds = array<i64: 10, 8>}, {pipeline_mode = #tpu.pipeline_mode<synchronous>, transform_indices = @transform_6, window_bounds = array<i64: 10, 1>}, {transform_indices = @transform_7, window_bounds = array<i64: 10, 128>}]} {
    %c0 = arith.constant 0 : index
    %c0_0 = arith.constant 0 : index
    %0 = vector.load %arg2[%c0, %c0_0] : memref<24x48xf32, #tpu.memory_space<vmem>>, vector<24x48xf32>
    %c0_1 = arith.constant 0 : index
    %c0_2 = arith.constant 0 : index
    %1 = vector.load %arg1[%c0_1, %c0_2] : memref<48x128xf32, #tpu.memory_space<vmem>>, vector<48x128xf32>
    %cst = arith.constant dense<0.000000e+00> : vector<24x128xf32>
    %2 = tpu.matmul %0, %1, %cst {dimension_numbers = #tpu.dot_dimension_numbers<[1], [0], [0], [1], [0, 0, 1, 1], [], []>} : vector<24x48xf32>, vector<48x128xf32>, vector<24x128xf32> -> vector<24x128xf32>
    %c0_3 = arith.constant 0 : index
    %c0_4 = arith.constant 0 : index
    %3 = vector.load %arg3[%c0_3, %c0_4] : memref<24x1xf32, #tpu.memory_space<vmem>>, vector<24x1xf32>
    %4 = vector.broadcast %3 : vector<24x1xf32> to vector<24x128xf32>
    %5 = arith.addf %2, %4 : vector<24x128xf32>
    %c0_5 = arith.constant 0 : index
    %c0_6 = arith.constant 0 : index
    %6 = vector.load %arg4[%c0_5, %c0_6] : memref<24x8xf32, #tpu.memory_space<vmem>>, vector<24x8xf32>
    %c0_7 = arith.constant 0 : index
    %c0_8 = arith.constant 0 : index
    %7 = vector.load %arg5[%c0_7, %c0_8] : memref<24x1xf32, #tpu.memory_space<vmem>>, vector<24x1xf32>
    %8 = vector.extract_strided_slice %5 {offsets = [0, 0], sizes = [8, 128], strides = [1, 1]} : vector<24x128xf32> to vector<8x128xf32>
    %9 = vector.extract_strided_slice %5 {offsets = [8, 0], sizes = [8, 128], strides = [1, 1]} : vector<24x128xf32> to vector<8x128xf32>
    %10 = vector.extract_strided_slice %5 {offsets = [16, 0], sizes = [8, 128], strides = [1, 1]} : vector<24x128xf32> to vector<8x128xf32>
    %cst_9 = arith.constant dense<0xFF800000> : vector<128xf32>
    %11 = vector.multi_reduction <maximumf>, %9, %cst_9 [0] : vector<8x128xf32> to vector<128xf32>
    %12 = vector.shape_cast %11 : vector<128xf32> to vector<1x128xf32>
    %cst_10 = arith.constant dense<0x7F800000> : vector<128xf32>
    %13 = vector.multi_reduction <minimumf>, %9, %cst_10 [0] : vector<8x128xf32> to vector<128xf32>
    %14 = vector.shape_cast %13 : vector<128xf32> to vector<1x128xf32>
    %cst_11 = arith.constant 0.000000e+00 : f32
    %15 = vector.broadcast %cst_11 : f32 to vector<8x128xf32>
    %16 = arith.cmpf oge, %8, %15 : vector<8x128xf32>
    %17 = vector.broadcast %12 : vector<1x128xf32> to vector<8x128xf32>
    %18 = arith.mulf %8, %17 : vector<8x128xf32>
    %19 = vector.broadcast %14 : vector<1x128xf32> to vector<8x128xf32>
    %20 = arith.mulf %8, %19 : vector<8x128xf32>
    %21 = arith.select %16, %18, %20 : vector<8x128xi1>, vector<8x128xf32>
    %cst_12 = arith.constant 0.000000e+00 : f32
    %22 = vector.broadcast %cst_12 : f32 to vector<8x128xf32>
    %23 = vector.extract_strided_slice %8 {offsets = [0, 0], sizes = [1, 128], strides = [1, 1]} : vector<8x128xf32> to vector<1x128xf32>
    %24 = vector.broadcast %23 : vector<1x128xf32> to vector<8x128xf32>
    %25 = arith.mulf %24, %9 : vector<8x128xf32>
    %26 = vector.extract_strided_slice %21 {offsets = [0, 0], sizes = [1, 128], strides = [1, 1]} : vector<8x128xf32> to vector<1x128xf32>
    %27 = vector.broadcast %26 : vector<1x128xf32> to vector<8x128xf32>
    %28 = arith.subf %25, %27 : vector<8x128xf32>
    %29 = math.exp %28 : vector<8x128xf32>
    %cst_13 = arith.constant dense<0.000000e+00> : vector<128xf32>
    %30 = vector.multi_reduction <add>, %29, %cst_13 [0] : vector<8x128xf32> to vector<128xf32>
    %31 = vector.shape_cast %30 : vector<128xf32> to vector<1x128xf32>
    %32 = vector.extract_strided_slice %10 {offsets = [0, 0], sizes = [1, 128], strides = [1, 1]} : vector<8x128xf32> to vector<1x128xf32>
    %33 = tpu.reciprocal %31 {approx = true} : vector<1x128xf32> -> vector<1x128xf32>
    %34 = arith.mulf %32, %33 : vector<1x128xf32>
    %35 = vector.broadcast %34 : vector<1x128xf32> to vector<8x128xf32>
    %36 = arith.mulf %35, %29 : vector<8x128xf32>
    %37 = arith.addf %22, %36 : vector<8x128xf32>
    %38 = vector.extract_strided_slice %8 {offsets = [1, 0], sizes = [1, 128], strides = [1, 1]} : vector<8x128xf32> to vector<1x128xf32>
    %39 = vector.broadcast %38 : vector<1x128xf32> to vector<8x128xf32>
    %40 = arith.mulf %39, %9 : vector<8x128xf32>
    %41 = vector.extract_strided_slice %21 {offsets = [1, 0], sizes = [1, 128], strides = [1, 1]} : vector<8x128xf32> to vector<1x128xf32>
    %42 = vector.broadcast %41 : vector<1x128xf32> to vector<8x128xf32>
    %43 = arith.subf %40, %42 : vector<8x128xf32>
    %44 = math.exp %43 : vector<8x128xf32>
    %cst_14 = arith.constant dense<0.000000e+00> : vector<128xf32>
    %45 = vector.multi_reduction <add>, %44, %cst_14 [0] : vector<8x128xf32> to vector<128xf32>
    %46 = vector.shape_cast %45 : vector<128xf32> to vector<1x128xf32>
    %47 = vector.extract_strided_slice %10 {offsets = [1, 0], sizes = [1, 128], strides = [1, 1]} : vector<8x128xf32> to vector<1x128xf32>
    %48 = tpu.reciprocal %46 {approx = true} : vector<1x128xf32> -> vector<1x128xf32>
    %49 = arith.mulf %47, %48 : vector<1x128xf32>
    %50 = vector.broadcast %49 : vector<1x128xf32> to vector<8x128xf32>
    %51 = arith.mulf %50, %44 : vector<8x128xf32>
    %52 = arith.addf %37, %51 : vector<8x128xf32>
    %53 = vector.extract_strided_slice %8 {offsets = [2, 0], sizes = [1, 128], strides = [1, 1]} : vector<8x128xf32> to vector<1x128xf32>
    %54 = vector.broadcast %53 : vector<1x128xf32> to vector<8x128xf32>
    %55 = arith.mulf %54, %9 : vector<8x128xf32>
    %56 = vector.extract_strided_slice %21 {offsets = [2, 0], sizes = [1, 128], strides = [1, 1]} : vector<8x128xf32> to vector<1x128xf32>
    %57 = vector.broadcast %56 : vector<1x128xf32> to vector<8x128xf32>
    %58 = arith.subf %55, %57 : vector<8x128xf32>
    %59 = math.exp %58 : vector<8x128xf32>
    %cst_15 = arith.constant dense<0.000000e+00> : vector<128xf32>
    %60 = vector.multi_reduction <add>, %59, %cst_15 [0] : vector<8x128xf32> to vector<128xf32>
    %61 = vector.shape_cast %60 : vector<128xf32> to vector<1x128xf32>
    %62 = vector.extract_strided_slice %10 {offsets = [2, 0], sizes = [1, 128], strides = [1, 1]} : vector<8x128xf32> to vector<1x128xf32>
    %63 = tpu.reciprocal %61 {approx = true} : vector<1x128xf32> -> vector<1x128xf32>
    %64 = arith.mulf %62, %63 : vector<1x128xf32>
    %65 = vector.broadcast %64 : vector<1x128xf32> to vector<8x128xf32>
    %66 = arith.mulf %65, %59 : vector<8x128xf32>
    %67 = arith.addf %52, %66 : vector<8x128xf32>
    %68 = vector.extract_strided_slice %8 {offsets = [3, 0], sizes = [1, 128], strides = [1, 1]} : vector<8x128xf32> to vector<1x128xf32>
    %69 = vector.broadcast %68 : vector<1x128xf32> to vector<8x128xf32>
    %70 = arith.mulf %69, %9 : vector<8x128xf32>
    %71 = vector.extract_strided_slice %21 {offsets = [3, 0], sizes = [1, 128], strides = [1, 1]} : vector<8x128xf32> to vector<1x128xf32>
    %72 = vector.broadcast %71 : vector<1x128xf32> to vector<8x128xf32>
    %73 = arith.subf %70, %72 : vector<8x128xf32>
    %74 = math.exp %73 : vector<8x128xf32>
    %cst_16 = arith.constant dense<0.000000e+00> : vector<128xf32>
    %75 = vector.multi_reduction <add>, %74, %cst_16 [0] : vector<8x128xf32> to vector<128xf32>
    %76 = vector.shape_cast %75 : vector<128xf32> to vector<1x128xf32>
    %77 = vector.extract_strided_slice %10 {offsets = [3, 0], sizes = [1, 128], strides = [1, 1]} : vector<8x128xf32> to vector<1x128xf32>
    %78 = tpu.reciprocal %76 {approx = true} : vector<1x128xf32> -> vector<1x128xf32>
    %79 = arith.mulf %77, %78 : vector<1x128xf32>
    %80 = vector.broadcast %79 : vector<1x128xf32> to vector<8x128xf32>
    %81 = arith.mulf %80, %74 : vector<8x128xf32>
    %82 = arith.addf %67, %81 : vector<8x128xf32>
    %83 = vector.extract_strided_slice %8 {offsets = [4, 0], sizes = [1, 128], strides = [1, 1]} : vector<8x128xf32> to vector<1x128xf32>
    %84 = vector.broadcast %83 : vector<1x128xf32> to vector<8x128xf32>
    %85 = arith.mulf %84, %9 : vector<8x128xf32>
    %86 = vector.extract_strided_slice %21 {offsets = [4, 0], sizes = [1, 128], strides = [1, 1]} : vector<8x128xf32> to vector<1x128xf32>
    %87 = vector.broadcast %86 : vector<1x128xf32> to vector<8x128xf32>
    %88 = arith.subf %85, %87 : vector<8x128xf32>
    %89 = math.exp %88 : vector<8x128xf32>
    %cst_17 = arith.constant dense<0.000000e+00> : vector<128xf32>
    %90 = vector.multi_reduction <add>, %89, %cst_17 [0] : vector<8x128xf32> to vector<128xf32>
    %91 = vector.shape_cast %90 : vector<128xf32> to vector<1x128xf32>
    %92 = vector.extract_strided_slice %10 {offsets = [4, 0], sizes = [1, 128], strides = [1, 1]} : vector<8x128xf32> to vector<1x128xf32>
    %93 = tpu.reciprocal %91 {approx = true} : vector<1x128xf32> -> vector<1x128xf32>
    %94 = arith.mulf %92, %93 : vector<1x128xf32>
    %95 = vector.broadcast %94 : vector<1x128xf32> to vector<8x128xf32>
    %96 = arith.mulf %95, %89 : vector<8x128xf32>
    %97 = arith.addf %82, %96 : vector<8x128xf32>
    %98 = vector.extract_strided_slice %8 {offsets = [5, 0], sizes = [1, 128], strides = [1, 1]} : vector<8x128xf32> to vector<1x128xf32>
    %99 = vector.broadcast %98 : vector<1x128xf32> to vector<8x128xf32>
    %100 = arith.mulf %99, %9 : vector<8x128xf32>
    %101 = vector.extract_strided_slice %21 {offsets = [5, 0], sizes = [1, 128], strides = [1, 1]} : vector<8x128xf32> to vector<1x128xf32>
    %102 = vector.broadcast %101 : vector<1x128xf32> to vector<8x128xf32>
    %103 = arith.subf %100, %102 : vector<8x128xf32>
    %104 = math.exp %103 : vector<8x128xf32>
    %cst_18 = arith.constant dense<0.000000e+00> : vector<128xf32>
    %105 = vector.multi_reduction <add>, %104, %cst_18 [0] : vector<8x128xf32> to vector<128xf32>
    %106 = vector.shape_cast %105 : vector<128xf32> to vector<1x128xf32>
    %107 = vector.extract_strided_slice %10 {offsets = [5, 0], sizes = [1, 128], strides = [1, 1]} : vector<8x128xf32> to vector<1x128xf32>
    %108 = tpu.reciprocal %106 {approx = true} : vector<1x128xf32> -> vector<1x128xf32>
    %109 = arith.mulf %107, %108 : vector<1x128xf32>
    %110 = vector.broadcast %109 : vector<1x128xf32> to vector<8x128xf32>
    %111 = arith.mulf %110, %104 : vector<8x128xf32>
    %112 = arith.addf %97, %111 : vector<8x128xf32>
    %113 = vector.extract_strided_slice %8 {offsets = [6, 0], sizes = [1, 128], strides = [1, 1]} : vector<8x128xf32> to vector<1x128xf32>
    %114 = vector.broadcast %113 : vector<1x128xf32> to vector<8x128xf32>
    %115 = arith.mulf %114, %9 : vector<8x128xf32>
    %116 = vector.extract_strided_slice %21 {offsets = [6, 0], sizes = [1, 128], strides = [1, 1]} : vector<8x128xf32> to vector<1x128xf32>
    %117 = vector.broadcast %116 : vector<1x128xf32> to vector<8x128xf32>
    %118 = arith.subf %115, %117 : vector<8x128xf32>
    %119 = math.exp %118 : vector<8x128xf32>
    %cst_19 = arith.constant dense<0.000000e+00> : vector<128xf32>
    %120 = vector.multi_reduction <add>, %119, %cst_19 [0] : vector<8x128xf32> to vector<128xf32>
    %121 = vector.shape_cast %120 : vector<128xf32> to vector<1x128xf32>
    %122 = vector.extract_strided_slice %10 {offsets = [6, 0], sizes = [1, 128], strides = [1, 1]} : vector<8x128xf32> to vector<1x128xf32>
    %123 = tpu.reciprocal %121 {approx = true} : vector<1x128xf32> -> vector<1x128xf32>
    %124 = arith.mulf %122, %123 : vector<1x128xf32>
    %125 = vector.broadcast %124 : vector<1x128xf32> to vector<8x128xf32>
    %126 = arith.mulf %125, %119 : vector<8x128xf32>
    %127 = arith.addf %112, %126 : vector<8x128xf32>
    %128 = vector.extract_strided_slice %8 {offsets = [7, 0], sizes = [1, 128], strides = [1, 1]} : vector<8x128xf32> to vector<1x128xf32>
    %129 = vector.broadcast %128 : vector<1x128xf32> to vector<8x128xf32>
    %130 = arith.mulf %129, %9 : vector<8x128xf32>
    %131 = vector.extract_strided_slice %21 {offsets = [7, 0], sizes = [1, 128], strides = [1, 1]} : vector<8x128xf32> to vector<1x128xf32>
    %132 = vector.broadcast %131 : vector<1x128xf32> to vector<8x128xf32>
    %133 = arith.subf %130, %132 : vector<8x128xf32>
    %134 = math.exp %133 : vector<8x128xf32>
    %cst_20 = arith.constant dense<0.000000e+00> : vector<128xf32>
    %135 = vector.multi_reduction <add>, %134, %cst_20 [0] : vector<8x128xf32> to vector<128xf32>
    %136 = vector.shape_cast %135 : vector<128xf32> to vector<1x128xf32>
    %137 = vector.extract_strided_slice %10 {offsets = [7, 0], sizes = [1, 128], strides = [1, 1]} : vector<8x128xf32> to vector<1x128xf32>
    %138 = tpu.reciprocal %136 {approx = true} : vector<1x128xf32> -> vector<1x128xf32>
    %139 = arith.mulf %137, %138 : vector<1x128xf32>
    %140 = vector.broadcast %139 : vector<1x128xf32> to vector<8x128xf32>
    %141 = arith.mulf %140, %134 : vector<8x128xf32>
    %142 = arith.addf %127, %141 : vector<8x128xf32>
    %cst_21 = arith.constant dense<0.000000e+00> : vector<24x128xf32>
    %143 = tpu.matmul %6, %142, %cst_21 {dimension_numbers = #tpu.dot_dimension_numbers<[1], [0], [0], [1], [0, 0, 1, 1], [], []>} : vector<24x8xf32>, vector<8x128xf32>, vector<24x128xf32> -> vector<24x128xf32>
    %144 = vector.broadcast %7 : vector<24x1xf32> to vector<24x128xf32>
    %145 = arith.addf %143, %144 : vector<24x128xf32>
    %146 = vector.extract_strided_slice %145 {offsets = [0, 0], sizes = [8, 128], strides = [1, 1]} : vector<24x128xf32> to vector<8x128xf32>
    %147 = vector.extract_strided_slice %145 {offsets = [8, 0], sizes = [8, 128], strides = [1, 1]} : vector<24x128xf32> to vector<8x128xf32>
    %148 = vector.extract_strided_slice %145 {offsets = [16, 0], sizes = [8, 128], strides = [1, 1]} : vector<24x128xf32> to vector<8x128xf32>
    %cst_22 = arith.constant dense<0xFF800000> : vector<128xf32>
    %149 = vector.multi_reduction <maximumf>, %147, %cst_22 [0] : vector<8x128xf32> to vector<128xf32>
    %150 = vector.shape_cast %149 : vector<128xf32> to vector<1x128xf32>
    %cst_23 = arith.constant dense<0x7F800000> : vector<128xf32>
    %151 = vector.multi_reduction <minimumf>, %147, %cst_23 [0] : vector<8x128xf32> to vector<128xf32>
    %152 = vector.shape_cast %151 : vector<128xf32> to vector<1x128xf32>
    %cst_24 = arith.constant 0.000000e+00 : f32
    %153 = vector.broadcast %cst_24 : f32 to vector<8x128xf32>
    %154 = arith.cmpf oge, %146, %153 : vector<8x128xf32>
    %155 = vector.broadcast %150 : vector<1x128xf32> to vector<8x128xf32>
    %156 = arith.mulf %146, %155 : vector<8x128xf32>
    %157 = vector.broadcast %152 : vector<1x128xf32> to vector<8x128xf32>
    %158 = arith.mulf %146, %157 : vector<8x128xf32>
    %159 = arith.select %154, %156, %158 : vector<8x128xi1>, vector<8x128xf32>
    %cst_25 = arith.constant 0.000000e+00 : f32
    %160 = vector.broadcast %cst_25 : f32 to vector<8x128xf32>
    %161 = vector.extract_strided_slice %146 {offsets = [0, 0], sizes = [1, 128], strides = [1, 1]} : vector<8x128xf32> to vector<1x128xf32>
    %162 = vector.broadcast %161 : vector<1x128xf32> to vector<8x128xf32>
    %163 = arith.mulf %162, %147 : vector<8x128xf32>
    %164 = vector.extract_strided_slice %159 {offsets = [0, 0], sizes = [1, 128], strides = [1, 1]} : vector<8x128xf32> to vector<1x128xf32>
    %165 = vector.broadcast %164 : vector<1x128xf32> to vector<8x128xf32>
    %166 = arith.subf %163, %165 : vector<8x128xf32>
    %167 = math.exp %166 : vector<8x128xf32>
    %cst_26 = arith.constant dense<0.000000e+00> : vector<128xf32>
    %168 = vector.multi_reduction <add>, %167, %cst_26 [0] : vector<8x128xf32> to vector<128xf32>
    %169 = vector.shape_cast %168 : vector<128xf32> to vector<1x128xf32>
    %170 = vector.extract_strided_slice %148 {offsets = [0, 0], sizes = [1, 128], strides = [1, 1]} : vector<8x128xf32> to vector<1x128xf32>
    %171 = tpu.reciprocal %169 {approx = true} : vector<1x128xf32> -> vector<1x128xf32>
    %172 = arith.mulf %170, %171 : vector<1x128xf32>
    %173 = vector.broadcast %172 : vector<1x128xf32> to vector<8x128xf32>
    %174 = arith.mulf %173, %167 : vector<8x128xf32>
    %175 = arith.addf %160, %174 : vector<8x128xf32>
    %176 = vector.extract_strided_slice %146 {offsets = [1, 0], sizes = [1, 128], strides = [1, 1]} : vector<8x128xf32> to vector<1x128xf32>
    %177 = vector.broadcast %176 : vector<1x128xf32> to vector<8x128xf32>
    %178 = arith.mulf %177, %147 : vector<8x128xf32>
    %179 = vector.extract_strided_slice %159 {offsets = [1, 0], sizes = [1, 128], strides = [1, 1]} : vector<8x128xf32> to vector<1x128xf32>
    %180 = vector.broadcast %179 : vector<1x128xf32> to vector<8x128xf32>
    %181 = arith.subf %178, %180 : vector<8x128xf32>
    %182 = math.exp %181 : vector<8x128xf32>
    %cst_27 = arith.constant dense<0.000000e+00> : vector<128xf32>
    %183 = vector.multi_reduction <add>, %182, %cst_27 [0] : vector<8x128xf32> to vector<128xf32>
    %184 = vector.shape_cast %183 : vector<128xf32> to vector<1x128xf32>
    %185 = vector.extract_strided_slice %148 {offsets = [1, 0], sizes = [1, 128], strides = [1, 1]} : vector<8x128xf32> to vector<1x128xf32>
    %186 = tpu.reciprocal %184 {approx = true} : vector<1x128xf32> -> vector<1x128xf32>
    %187 = arith.mulf %185, %186 : vector<1x128xf32>
    %188 = vector.broadcast %187 : vector<1x128xf32> to vector<8x128xf32>
    %189 = arith.mulf %188, %182 : vector<8x128xf32>
    %190 = arith.addf %175, %189 : vector<8x128xf32>
    %191 = vector.extract_strided_slice %146 {offsets = [2, 0], sizes = [1, 128], strides = [1, 1]} : vector<8x128xf32> to vector<1x128xf32>
    %192 = vector.broadcast %191 : vector<1x128xf32> to vector<8x128xf32>
    %193 = arith.mulf %192, %147 : vector<8x128xf32>
    %194 = vector.extract_strided_slice %159 {offsets = [2, 0], sizes = [1, 128], strides = [1, 1]} : vector<8x128xf32> to vector<1x128xf32>
    %195 = vector.broadcast %194 : vector<1x128xf32> to vector<8x128xf32>
    %196 = arith.subf %193, %195 : vector<8x128xf32>
    %197 = math.exp %196 : vector<8x128xf32>
    %cst_28 = arith.constant dense<0.000000e+00> : vector<128xf32>
    %198 = vector.multi_reduction <add>, %197, %cst_28 [0] : vector<8x128xf32> to vector<128xf32>
    %199 = vector.shape_cast %198 : vector<128xf32> to vector<1x128xf32>
    %200 = vector.extract_strided_slice %148 {offsets = [2, 0], sizes = [1, 128], strides = [1, 1]} : vector<8x128xf32> to vector<1x128xf32>
    %201 = tpu.reciprocal %199 {approx = true} : vector<1x128xf32> -> vector<1x128xf32>
    %202 = arith.mulf %200, %201 : vector<1x128xf32>
    %203 = vector.broadcast %202 : vector<1x128xf32> to vector<8x128xf32>
    %204 = arith.mulf %203, %197 : vector<8x128xf32>
    %205 = arith.addf %190, %204 : vector<8x128xf32>
    %206 = vector.extract_strided_slice %146 {offsets = [3, 0], sizes = [1, 128], strides = [1, 1]} : vector<8x128xf32> to vector<1x128xf32>
    %207 = vector.broadcast %206 : vector<1x128xf32> to vector<8x128xf32>
    %208 = arith.mulf %207, %147 : vector<8x128xf32>
    %209 = vector.extract_strided_slice %159 {offsets = [3, 0], sizes = [1, 128], strides = [1, 1]} : vector<8x128xf32> to vector<1x128xf32>
    %210 = vector.broadcast %209 : vector<1x128xf32> to vector<8x128xf32>
    %211 = arith.subf %208, %210 : vector<8x128xf32>
    %212 = math.exp %211 : vector<8x128xf32>
    %cst_29 = arith.constant dense<0.000000e+00> : vector<128xf32>
    %213 = vector.multi_reduction <add>, %212, %cst_29 [0] : vector<8x128xf32> to vector<128xf32>
    %214 = vector.shape_cast %213 : vector<128xf32> to vector<1x128xf32>
    %215 = vector.extract_strided_slice %148 {offsets = [3, 0], sizes = [1, 128], strides = [1, 1]} : vector<8x128xf32> to vector<1x128xf32>
    %216 = tpu.reciprocal %214 {approx = true} : vector<1x128xf32> -> vector<1x128xf32>
    %217 = arith.mulf %215, %216 : vector<1x128xf32>
    %218 = vector.broadcast %217 : vector<1x128xf32> to vector<8x128xf32>
    %219 = arith.mulf %218, %212 : vector<8x128xf32>
    %220 = arith.addf %205, %219 : vector<8x128xf32>
    %221 = vector.extract_strided_slice %146 {offsets = [4, 0], sizes = [1, 128], strides = [1, 1]} : vector<8x128xf32> to vector<1x128xf32>
    %222 = vector.broadcast %221 : vector<1x128xf32> to vector<8x128xf32>
    %223 = arith.mulf %222, %147 : vector<8x128xf32>
    %224 = vector.extract_strided_slice %159 {offsets = [4, 0], sizes = [1, 128], strides = [1, 1]} : vector<8x128xf32> to vector<1x128xf32>
    %225 = vector.broadcast %224 : vector<1x128xf32> to vector<8x128xf32>
    %226 = arith.subf %223, %225 : vector<8x128xf32>
    %227 = math.exp %226 : vector<8x128xf32>
    %cst_30 = arith.constant dense<0.000000e+00> : vector<128xf32>
    %228 = vector.multi_reduction <add>, %227, %cst_30 [0] : vector<8x128xf32> to vector<128xf32>
    %229 = vector.shape_cast %228 : vector<128xf32> to vector<1x128xf32>
    %230 = vector.extract_strided_slice %148 {offsets = [4, 0], sizes = [1, 128], strides = [1, 1]} : vector<8x128xf32> to vector<1x128xf32>
    %231 = tpu.reciprocal %229 {approx = true} : vector<1x128xf32> -> vector<1x128xf32>
    %232 = arith.mulf %230, %231 : vector<1x128xf32>
    %233 = vector.broadcast %232 : vector<1x128xf32> to vector<8x128xf32>
    %234 = arith.mulf %233, %227 : vector<8x128xf32>
    %235 = arith.addf %220, %234 : vector<8x128xf32>
    %236 = vector.extract_strided_slice %146 {offsets = [5, 0], sizes = [1, 128], strides = [1, 1]} : vector<8x128xf32> to vector<1x128xf32>
    %237 = vector.broadcast %236 : vector<1x128xf32> to vector<8x128xf32>
    %238 = arith.mulf %237, %147 : vector<8x128xf32>
    %239 = vector.extract_strided_slice %159 {offsets = [5, 0], sizes = [1, 128], strides = [1, 1]} : vector<8x128xf32> to vector<1x128xf32>
    %240 = vector.broadcast %239 : vector<1x128xf32> to vector<8x128xf32>
    %241 = arith.subf %238, %240 : vector<8x128xf32>
    %242 = math.exp %241 : vector<8x128xf32>
    %cst_31 = arith.constant dense<0.000000e+00> : vector<128xf32>
    %243 = vector.multi_reduction <add>, %242, %cst_31 [0] : vector<8x128xf32> to vector<128xf32>
    %244 = vector.shape_cast %243 : vector<128xf32> to vector<1x128xf32>
    %245 = vector.extract_strided_slice %148 {offsets = [5, 0], sizes = [1, 128], strides = [1, 1]} : vector<8x128xf32> to vector<1x128xf32>
    %246 = tpu.reciprocal %244 {approx = true} : vector<1x128xf32> -> vector<1x128xf32>
    %247 = arith.mulf %245, %246 : vector<1x128xf32>
    %248 = vector.broadcast %247 : vector<1x128xf32> to vector<8x128xf32>
    %249 = arith.mulf %248, %242 : vector<8x128xf32>
    %250 = arith.addf %235, %249 : vector<8x128xf32>
    %251 = vector.extract_strided_slice %146 {offsets = [6, 0], sizes = [1, 128], strides = [1, 1]} : vector<8x128xf32> to vector<1x128xf32>
    %252 = vector.broadcast %251 : vector<1x128xf32> to vector<8x128xf32>
    %253 = arith.mulf %252, %147 : vector<8x128xf32>
    %254 = vector.extract_strided_slice %159 {offsets = [6, 0], sizes = [1, 128], strides = [1, 1]} : vector<8x128xf32> to vector<1x128xf32>
    %255 = vector.broadcast %254 : vector<1x128xf32> to vector<8x128xf32>
    %256 = arith.subf %253, %255 : vector<8x128xf32>
    %257 = math.exp %256 : vector<8x128xf32>
    %cst_32 = arith.constant dense<0.000000e+00> : vector<128xf32>
    %258 = vector.multi_reduction <add>, %257, %cst_32 [0] : vector<8x128xf32> to vector<128xf32>
    %259 = vector.shape_cast %258 : vector<128xf32> to vector<1x128xf32>
    %260 = vector.extract_strided_slice %148 {offsets = [6, 0], sizes = [1, 128], strides = [1, 1]} : vector<8x128xf32> to vector<1x128xf32>
    %261 = tpu.reciprocal %259 {approx = true} : vector<1x128xf32> -> vector<1x128xf32>
    %262 = arith.mulf %260, %261 : vector<1x128xf32>
    %263 = vector.broadcast %262 : vector<1x128xf32> to vector<8x128xf32>
    %264 = arith.mulf %263, %257 : vector<8x128xf32>
    %265 = arith.addf %250, %264 : vector<8x128xf32>
    %266 = vector.extract_strided_slice %146 {offsets = [7, 0], sizes = [1, 128], strides = [1, 1]} : vector<8x128xf32> to vector<1x128xf32>
    %267 = vector.broadcast %266 : vector<1x128xf32> to vector<8x128xf32>
    %268 = arith.mulf %267, %147 : vector<8x128xf32>
    %269 = vector.extract_strided_slice %159 {offsets = [7, 0], sizes = [1, 128], strides = [1, 1]} : vector<8x128xf32> to vector<1x128xf32>
    %270 = vector.broadcast %269 : vector<1x128xf32> to vector<8x128xf32>
    %271 = arith.subf %268, %270 : vector<8x128xf32>
    %272 = math.exp %271 : vector<8x128xf32>
    %cst_33 = arith.constant dense<0.000000e+00> : vector<128xf32>
    %273 = vector.multi_reduction <add>, %272, %cst_33 [0] : vector<8x128xf32> to vector<128xf32>
    %274 = vector.shape_cast %273 : vector<128xf32> to vector<1x128xf32>
    %275 = vector.extract_strided_slice %148 {offsets = [7, 0], sizes = [1, 128], strides = [1, 1]} : vector<8x128xf32> to vector<1x128xf32>
    %276 = tpu.reciprocal %274 {approx = true} : vector<1x128xf32> -> vector<1x128xf32>
    %277 = arith.mulf %275, %276 : vector<1x128xf32>
    %278 = vector.broadcast %277 : vector<1x128xf32> to vector<8x128xf32>
    %279 = arith.mulf %278, %272 : vector<8x128xf32>
    %280 = arith.addf %265, %279 : vector<8x128xf32>
    %cst_34 = arith.constant dense<0.000000e+00> : vector<24x128xf32>
    %281 = tpu.matmul %6, %280, %cst_34 {dimension_numbers = #tpu.dot_dimension_numbers<[1], [0], [0], [1], [0, 0, 1, 1], [], []>} : vector<24x8xf32>, vector<8x128xf32>, vector<24x128xf32> -> vector<24x128xf32>
    %282 = vector.broadcast %7 : vector<24x1xf32> to vector<24x128xf32>
    %283 = arith.addf %281, %282 : vector<24x128xf32>
    %284 = vector.extract_strided_slice %283 {offsets = [0, 0], sizes = [8, 128], strides = [1, 1]} : vector<24x128xf32> to vector<8x128xf32>
    %285 = vector.extract_strided_slice %283 {offsets = [8, 0], sizes = [8, 128], strides = [1, 1]} : vector<24x128xf32> to vector<8x128xf32>
    %286 = vector.extract_strided_slice %283 {offsets = [16, 0], sizes = [8, 128], strides = [1, 1]} : vector<24x128xf32> to vector<8x128xf32>
    %cst_35 = arith.constant dense<0xFF800000> : vector<128xf32>
    %287 = vector.multi_reduction <maximumf>, %285, %cst_35 [0] : vector<8x128xf32> to vector<128xf32>
    %288 = vector.shape_cast %287 : vector<128xf32> to vector<1x128xf32>
    %cst_36 = arith.constant dense<0x7F800000> : vector<128xf32>
    %289 = vector.multi_reduction <minimumf>, %285, %cst_36 [0] : vector<8x128xf32> to vector<128xf32>
    %290 = vector.shape_cast %289 : vector<128xf32> to vector<1x128xf32>
    %cst_37 = arith.constant 0.000000e+00 : f32
    %291 = vector.broadcast %cst_37 : f32 to vector<8x128xf32>
    %292 = arith.cmpf oge, %284, %291 : vector<8x128xf32>
    %293 = vector.broadcast %288 : vector<1x128xf32> to vector<8x128xf32>
    %294 = arith.mulf %284, %293 : vector<8x128xf32>
    %295 = vector.broadcast %290 : vector<1x128xf32> to vector<8x128xf32>
    %296 = arith.mulf %284, %295 : vector<8x128xf32>
    %297 = arith.select %292, %294, %296 : vector<8x128xi1>, vector<8x128xf32>
    %cst_38 = arith.constant 0.000000e+00 : f32
    %298 = vector.broadcast %cst_38 : f32 to vector<8x128xf32>
    %299 = vector.extract_strided_slice %284 {offsets = [0, 0], sizes = [1, 128], strides = [1, 1]} : vector<8x128xf32> to vector<1x128xf32>
    %300 = vector.broadcast %299 : vector<1x128xf32> to vector<8x128xf32>
    %301 = arith.mulf %300, %285 : vector<8x128xf32>
    %302 = vector.extract_strided_slice %297 {offsets = [0, 0], sizes = [1, 128], strides = [1, 1]} : vector<8x128xf32> to vector<1x128xf32>
    %303 = vector.broadcast %302 : vector<1x128xf32> to vector<8x128xf32>
    %304 = arith.subf %301, %303 : vector<8x128xf32>
    %305 = math.exp %304 : vector<8x128xf32>
    %cst_39 = arith.constant dense<0.000000e+00> : vector<128xf32>
    %306 = vector.multi_reduction <add>, %305, %cst_39 [0] : vector<8x128xf32> to vector<128xf32>
    %307 = vector.shape_cast %306 : vector<128xf32> to vector<1x128xf32>
    %308 = vector.extract_strided_slice %286 {offsets = [0, 0], sizes = [1, 128], strides = [1, 1]} : vector<8x128xf32> to vector<1x128xf32>
    %309 = tpu.reciprocal %307 {approx = true} : vector<1x128xf32> -> vector<1x128xf32>
    %310 = arith.mulf %308, %309 : vector<1x128xf32>
    %311 = vector.broadcast %310 : vector<1x128xf32> to vector<8x128xf32>
    %312 = arith.mulf %311, %305 : vector<8x128xf32>
    %313 = arith.addf %298, %312 : vector<8x128xf32>
    %314 = vector.extract_strided_slice %284 {offsets = [1, 0], sizes = [1, 128], strides = [1, 1]} : vector<8x128xf32> to vector<1x128xf32>
    %315 = vector.broadcast %314 : vector<1x128xf32> to vector<8x128xf32>
    %316 = arith.mulf %315, %285 : vector<8x128xf32>
    %317 = vector.extract_strided_slice %297 {offsets = [1, 0], sizes = [1, 128], strides = [1, 1]} : vector<8x128xf32> to vector<1x128xf32>
    %318 = vector.broadcast %317 : vector<1x128xf32> to vector<8x128xf32>
    %319 = arith.subf %316, %318 : vector<8x128xf32>
    %320 = math.exp %319 : vector<8x128xf32>
    %cst_40 = arith.constant dense<0.000000e+00> : vector<128xf32>
    %321 = vector.multi_reduction <add>, %320, %cst_40 [0] : vector<8x128xf32> to vector<128xf32>
    %322 = vector.shape_cast %321 : vector<128xf32> to vector<1x128xf32>
    %323 = vector.extract_strided_slice %286 {offsets = [1, 0], sizes = [1, 128], strides = [1, 1]} : vector<8x128xf32> to vector<1x128xf32>
    %324 = tpu.reciprocal %322 {approx = true} : vector<1x128xf32> -> vector<1x128xf32>
    %325 = arith.mulf %323, %324 : vector<1x128xf32>
    %326 = vector.broadcast %325 : vector<1x128xf32> to vector<8x128xf32>
    %327 = arith.mulf %326, %320 : vector<8x128xf32>
    %328 = arith.addf %313, %327 : vector<8x128xf32>
    %329 = vector.extract_strided_slice %284 {offsets = [2, 0], sizes = [1, 128], strides = [1, 1]} : vector<8x128xf32> to vector<1x128xf32>
    %330 = vector.broadcast %329 : vector<1x128xf32> to vector<8x128xf32>
    %331 = arith.mulf %330, %285 : vector<8x128xf32>
    %332 = vector.extract_strided_slice %297 {offsets = [2, 0], sizes = [1, 128], strides = [1, 1]} : vector<8x128xf32> to vector<1x128xf32>
    %333 = vector.broadcast %332 : vector<1x128xf32> to vector<8x128xf32>
    %334 = arith.subf %331, %333 : vector<8x128xf32>
    %335 = math.exp %334 : vector<8x128xf32>
    %cst_41 = arith.constant dense<0.000000e+00> : vector<128xf32>
    %336 = vector.multi_reduction <add>, %335, %cst_41 [0] : vector<8x128xf32> to vector<128xf32>
    %337 = vector.shape_cast %336 : vector<128xf32> to vector<1x128xf32>
    %338 = vector.extract_strided_slice %286 {offsets = [2, 0], sizes = [1, 128], strides = [1, 1]} : vector<8x128xf32> to vector<1x128xf32>
    %339 = tpu.reciprocal %337 {approx = true} : vector<1x128xf32> -> vector<1x128xf32>
    %340 = arith.mulf %338, %339 : vector<1x128xf32>
    %341 = vector.broadcast %340 : vector<1x128xf32> to vector<8x128xf32>
    %342 = arith.mulf %341, %335 : vector<8x128xf32>
    %343 = arith.addf %328, %342 : vector<8x128xf32>
    %344 = vector.extract_strided_slice %284 {offsets = [3, 0], sizes = [1, 128], strides = [1, 1]} : vector<8x128xf32> to vector<1x128xf32>
    %345 = vector.broadcast %344 : vector<1x128xf32> to vector<8x128xf32>
    %346 = arith.mulf %345, %285 : vector<8x128xf32>
    %347 = vector.extract_strided_slice %297 {offsets = [3, 0], sizes = [1, 128], strides = [1, 1]} : vector<8x128xf32> to vector<1x128xf32>
    %348 = vector.broadcast %347 : vector<1x128xf32> to vector<8x128xf32>
    %349 = arith.subf %346, %348 : vector<8x128xf32>
    %350 = math.exp %349 : vector<8x128xf32>
    %cst_42 = arith.constant dense<0.000000e+00> : vector<128xf32>
    %351 = vector.multi_reduction <add>, %350, %cst_42 [0] : vector<8x128xf32> to vector<128xf32>
    %352 = vector.shape_cast %351 : vector<128xf32> to vector<1x128xf32>
    %353 = vector.extract_strided_slice %286 {offsets = [3, 0], sizes = [1, 128], strides = [1, 1]} : vector<8x128xf32> to vector<1x128xf32>
    %354 = tpu.reciprocal %352 {approx = true} : vector<1x128xf32> -> vector<1x128xf32>
    %355 = arith.mulf %353, %354 : vector<1x128xf32>
    %356 = vector.broadcast %355 : vector<1x128xf32> to vector<8x128xf32>
    %357 = arith.mulf %356, %350 : vector<8x128xf32>
    %358 = arith.addf %343, %357 : vector<8x128xf32>
    %359 = vector.extract_strided_slice %284 {offsets = [4, 0], sizes = [1, 128], strides = [1, 1]} : vector<8x128xf32> to vector<1x128xf32>
    %360 = vector.broadcast %359 : vector<1x128xf32> to vector<8x128xf32>
    %361 = arith.mulf %360, %285 : vector<8x128xf32>
    %362 = vector.extract_strided_slice %297 {offsets = [4, 0], sizes = [1, 128], strides = [1, 1]} : vector<8x128xf32> to vector<1x128xf32>
    %363 = vector.broadcast %362 : vector<1x128xf32> to vector<8x128xf32>
    %364 = arith.subf %361, %363 : vector<8x128xf32>
    %365 = math.exp %364 : vector<8x128xf32>
    %cst_43 = arith.constant dense<0.000000e+00> : vector<128xf32>
    %366 = vector.multi_reduction <add>, %365, %cst_43 [0] : vector<8x128xf32> to vector<128xf32>
    %367 = vector.shape_cast %366 : vector<128xf32> to vector<1x128xf32>
    %368 = vector.extract_strided_slice %286 {offsets = [4, 0], sizes = [1, 128], strides = [1, 1]} : vector<8x128xf32> to vector<1x128xf32>
    %369 = tpu.reciprocal %367 {approx = true} : vector<1x128xf32> -> vector<1x128xf32>
    %370 = arith.mulf %368, %369 : vector<1x128xf32>
    %371 = vector.broadcast %370 : vector<1x128xf32> to vector<8x128xf32>
    %372 = arith.mulf %371, %365 : vector<8x128xf32>
    %373 = arith.addf %358, %372 : vector<8x128xf32>
    %374 = vector.extract_strided_slice %284 {offsets = [5, 0], sizes = [1, 128], strides = [1, 1]} : vector<8x128xf32> to vector<1x128xf32>
    %375 = vector.broadcast %374 : vector<1x128xf32> to vector<8x128xf32>
    %376 = arith.mulf %375, %285 : vector<8x128xf32>
    %377 = vector.extract_strided_slice %297 {offsets = [5, 0], sizes = [1, 128], strides = [1, 1]} : vector<8x128xf32> to vector<1x128xf32>
    %378 = vector.broadcast %377 : vector<1x128xf32> to vector<8x128xf32>
    %379 = arith.subf %376, %378 : vector<8x128xf32>
    %380 = math.exp %379 : vector<8x128xf32>
    %cst_44 = arith.constant dense<0.000000e+00> : vector<128xf32>
    %381 = vector.multi_reduction <add>, %380, %cst_44 [0] : vector<8x128xf32> to vector<128xf32>
    %382 = vector.shape_cast %381 : vector<128xf32> to vector<1x128xf32>
    %383 = vector.extract_strided_slice %286 {offsets = [5, 0], sizes = [1, 128], strides = [1, 1]} : vector<8x128xf32> to vector<1x128xf32>
    %384 = tpu.reciprocal %382 {approx = true} : vector<1x128xf32> -> vector<1x128xf32>
    %385 = arith.mulf %383, %384 : vector<1x128xf32>
    %386 = vector.broadcast %385 : vector<1x128xf32> to vector<8x128xf32>
    %387 = arith.mulf %386, %380 : vector<8x128xf32>
    %388 = arith.addf %373, %387 : vector<8x128xf32>
    %389 = vector.extract_strided_slice %284 {offsets = [6, 0], sizes = [1, 128], strides = [1, 1]} : vector<8x128xf32> to vector<1x128xf32>
    %390 = vector.broadcast %389 : vector<1x128xf32> to vector<8x128xf32>
    %391 = arith.mulf %390, %285 : vector<8x128xf32>
    %392 = vector.extract_strided_slice %297 {offsets = [6, 0], sizes = [1, 128], strides = [1, 1]} : vector<8x128xf32> to vector<1x128xf32>
    %393 = vector.broadcast %392 : vector<1x128xf32> to vector<8x128xf32>
    %394 = arith.subf %391, %393 : vector<8x128xf32>
    %395 = math.exp %394 : vector<8x128xf32>
    %cst_45 = arith.constant dense<0.000000e+00> : vector<128xf32>
    %396 = vector.multi_reduction <add>, %395, %cst_45 [0] : vector<8x128xf32> to vector<128xf32>
    %397 = vector.shape_cast %396 : vector<128xf32> to vector<1x128xf32>
    %398 = vector.extract_strided_slice %286 {offsets = [6, 0], sizes = [1, 128], strides = [1, 1]} : vector<8x128xf32> to vector<1x128xf32>
    %399 = tpu.reciprocal %397 {approx = true} : vector<1x128xf32> -> vector<1x128xf32>
    %400 = arith.mulf %398, %399 : vector<1x128xf32>
    %401 = vector.broadcast %400 : vector<1x128xf32> to vector<8x128xf32>
    %402 = arith.mulf %401, %395 : vector<8x128xf32>
    %403 = arith.addf %388, %402 : vector<8x128xf32>
    %404 = vector.extract_strided_slice %284 {offsets = [7, 0], sizes = [1, 128], strides = [1, 1]} : vector<8x128xf32> to vector<1x128xf32>
    %405 = vector.broadcast %404 : vector<1x128xf32> to vector<8x128xf32>
    %406 = arith.mulf %405, %285 : vector<8x128xf32>
    %407 = vector.extract_strided_slice %297 {offsets = [7, 0], sizes = [1, 128], strides = [1, 1]} : vector<8x128xf32> to vector<1x128xf32>
    %408 = vector.broadcast %407 : vector<1x128xf32> to vector<8x128xf32>
    %409 = arith.subf %406, %408 : vector<8x128xf32>
    %410 = math.exp %409 : vector<8x128xf32>
    %cst_46 = arith.constant dense<0.000000e+00> : vector<128xf32>
    %411 = vector.multi_reduction <add>, %410, %cst_46 [0] : vector<8x128xf32> to vector<128xf32>
    %412 = vector.shape_cast %411 : vector<128xf32> to vector<1x128xf32>
    %413 = vector.extract_strided_slice %286 {offsets = [7, 0], sizes = [1, 128], strides = [1, 1]} : vector<8x128xf32> to vector<1x128xf32>
    %414 = tpu.reciprocal %412 {approx = true} : vector<1x128xf32> -> vector<1x128xf32>
    %415 = arith.mulf %413, %414 : vector<1x128xf32>
    %416 = vector.broadcast %415 : vector<1x128xf32> to vector<8x128xf32>
    %417 = arith.mulf %416, %410 : vector<8x128xf32>
    %418 = arith.addf %403, %417 : vector<8x128xf32>
    %cst_47 = arith.constant dense<0.000000e+00> : vector<24x128xf32>
    %419 = tpu.matmul %6, %418, %cst_47 {dimension_numbers = #tpu.dot_dimension_numbers<[1], [0], [0], [1], [0, 0, 1, 1], [], []>} : vector<24x8xf32>, vector<8x128xf32>, vector<24x128xf32> -> vector<24x128xf32>
    %420 = vector.broadcast %7 : vector<24x1xf32> to vector<24x128xf32>
    %421 = arith.addf %419, %420 : vector<24x128xf32>
    %422 = vector.extract_strided_slice %421 {offsets = [0, 0], sizes = [8, 128], strides = [1, 1]} : vector<24x128xf32> to vector<8x128xf32>
    %423 = vector.extract_strided_slice %421 {offsets = [8, 0], sizes = [8, 128], strides = [1, 1]} : vector<24x128xf32> to vector<8x128xf32>
    %424 = vector.extract_strided_slice %421 {offsets = [16, 0], sizes = [8, 128], strides = [1, 1]} : vector<24x128xf32> to vector<8x128xf32>
    %cst_48 = arith.constant dense<0xFF800000> : vector<128xf32>
    %425 = vector.multi_reduction <maximumf>, %423, %cst_48 [0] : vector<8x128xf32> to vector<128xf32>
    %426 = vector.shape_cast %425 : vector<128xf32> to vector<1x128xf32>
    %cst_49 = arith.constant dense<0x7F800000> : vector<128xf32>
    %427 = vector.multi_reduction <minimumf>, %423, %cst_49 [0] : vector<8x128xf32> to vector<128xf32>
    %428 = vector.shape_cast %427 : vector<128xf32> to vector<1x128xf32>
    %cst_50 = arith.constant 0.000000e+00 : f32
    %429 = vector.broadcast %cst_50 : f32 to vector<8x128xf32>
    %430 = arith.cmpf oge, %422, %429 : vector<8x128xf32>
    %431 = vector.broadcast %426 : vector<1x128xf32> to vector<8x128xf32>
    %432 = arith.mulf %422, %431 : vector<8x128xf32>
    %433 = vector.broadcast %428 : vector<1x128xf32> to vector<8x128xf32>
    %434 = arith.mulf %422, %433 : vector<8x128xf32>
    %435 = arith.select %430, %432, %434 : vector<8x128xi1>, vector<8x128xf32>
    %cst_51 = arith.constant 0.000000e+00 : f32
    %436 = vector.broadcast %cst_51 : f32 to vector<8x128xf32>
    %437 = vector.extract_strided_slice %422 {offsets = [0, 0], sizes = [1, 128], strides = [1, 1]} : vector<8x128xf32> to vector<1x128xf32>
    %438 = vector.broadcast %437 : vector<1x128xf32> to vector<8x128xf32>
    %439 = arith.mulf %438, %423 : vector<8x128xf32>
    %440 = vector.extract_strided_slice %435 {offsets = [0, 0], sizes = [1, 128], strides = [1, 1]} : vector<8x128xf32> to vector<1x128xf32>
    %441 = vector.broadcast %440 : vector<1x128xf32> to vector<8x128xf32>
    %442 = arith.subf %439, %441 : vector<8x128xf32>
    %443 = math.exp %442 : vector<8x128xf32>
    %cst_52 = arith.constant dense<0.000000e+00> : vector<128xf32>
    %444 = vector.multi_reduction <add>, %443, %cst_52 [0] : vector<8x128xf32> to vector<128xf32>
    %445 = vector.shape_cast %444 : vector<128xf32> to vector<1x128xf32>
    %446 = vector.extract_strided_slice %424 {offsets = [0, 0], sizes = [1, 128], strides = [1, 1]} : vector<8x128xf32> to vector<1x128xf32>
    %447 = tpu.reciprocal %445 {approx = true} : vector<1x128xf32> -> vector<1x128xf32>
    %448 = arith.mulf %446, %447 : vector<1x128xf32>
    %449 = vector.broadcast %448 : vector<1x128xf32> to vector<8x128xf32>
    %450 = arith.mulf %449, %443 : vector<8x128xf32>
    %451 = arith.addf %436, %450 : vector<8x128xf32>
    %452 = vector.extract_strided_slice %422 {offsets = [1, 0], sizes = [1, 128], strides = [1, 1]} : vector<8x128xf32> to vector<1x128xf32>
    %453 = vector.broadcast %452 : vector<1x128xf32> to vector<8x128xf32>
    %454 = arith.mulf %453, %423 : vector<8x128xf32>
    %455 = vector.extract_strided_slice %435 {offsets = [1, 0], sizes = [1, 128], strides = [1, 1]} : vector<8x128xf32> to vector<1x128xf32>
    %456 = vector.broadcast %455 : vector<1x128xf32> to vector<8x128xf32>
    %457 = arith.subf %454, %456 : vector<8x128xf32>
    %458 = math.exp %457 : vector<8x128xf32>
    %cst_53 = arith.constant dense<0.000000e+00> : vector<128xf32>
    %459 = vector.multi_reduction <add>, %458, %cst_53 [0] : vector<8x128xf32> to vector<128xf32>
    %460 = vector.shape_cast %459 : vector<128xf32> to vector<1x128xf32>
    %461 = vector.extract_strided_slice %424 {offsets = [1, 0], sizes = [1, 128], strides = [1, 1]} : vector<8x128xf32> to vector<1x128xf32>
    %462 = tpu.reciprocal %460 {approx = true} : vector<1x128xf32> -> vector<1x128xf32>
    %463 = arith.mulf %461, %462 : vector<1x128xf32>
    %464 = vector.broadcast %463 : vector<1x128xf32> to vector<8x128xf32>
    %465 = arith.mulf %464, %458 : vector<8x128xf32>
    %466 = arith.addf %451, %465 : vector<8x128xf32>
    %467 = vector.extract_strided_slice %422 {offsets = [2, 0], sizes = [1, 128], strides = [1, 1]} : vector<8x128xf32> to vector<1x128xf32>
    %468 = vector.broadcast %467 : vector<1x128xf32> to vector<8x128xf32>
    %469 = arith.mulf %468, %423 : vector<8x128xf32>
    %470 = vector.extract_strided_slice %435 {offsets = [2, 0], sizes = [1, 128], strides = [1, 1]} : vector<8x128xf32> to vector<1x128xf32>
    %471 = vector.broadcast %470 : vector<1x128xf32> to vector<8x128xf32>
    %472 = arith.subf %469, %471 : vector<8x128xf32>
    %473 = math.exp %472 : vector<8x128xf32>
    %cst_54 = arith.constant dense<0.000000e+00> : vector<128xf32>
    %474 = vector.multi_reduction <add>, %473, %cst_54 [0] : vector<8x128xf32> to vector<128xf32>
    %475 = vector.shape_cast %474 : vector<128xf32> to vector<1x128xf32>
    %476 = vector.extract_strided_slice %424 {offsets = [2, 0], sizes = [1, 128], strides = [1, 1]} : vector<8x128xf32> to vector<1x128xf32>
    %477 = tpu.reciprocal %475 {approx = true} : vector<1x128xf32> -> vector<1x128xf32>
    %478 = arith.mulf %476, %477 : vector<1x128xf32>
    %479 = vector.broadcast %478 : vector<1x128xf32> to vector<8x128xf32>
    %480 = arith.mulf %479, %473 : vector<8x128xf32>
    %481 = arith.addf %466, %480 : vector<8x128xf32>
    %482 = vector.extract_strided_slice %422 {offsets = [3, 0], sizes = [1, 128], strides = [1, 1]} : vector<8x128xf32> to vector<1x128xf32>
    %483 = vector.broadcast %482 : vector<1x128xf32> to vector<8x128xf32>
    %484 = arith.mulf %483, %423 : vector<8x128xf32>
    %485 = vector.extract_strided_slice %435 {offsets = [3, 0], sizes = [1, 128], strides = [1, 1]} : vector<8x128xf32> to vector<1x128xf32>
    %486 = vector.broadcast %485 : vector<1x128xf32> to vector<8x128xf32>
    %487 = arith.subf %484, %486 : vector<8x128xf32>
    %488 = math.exp %487 : vector<8x128xf32>
    %cst_55 = arith.constant dense<0.000000e+00> : vector<128xf32>
    %489 = vector.multi_reduction <add>, %488, %cst_55 [0] : vector<8x128xf32> to vector<128xf32>
    %490 = vector.shape_cast %489 : vector<128xf32> to vector<1x128xf32>
    %491 = vector.extract_strided_slice %424 {offsets = [3, 0], sizes = [1, 128], strides = [1, 1]} : vector<8x128xf32> to vector<1x128xf32>
    %492 = tpu.reciprocal %490 {approx = true} : vector<1x128xf32> -> vector<1x128xf32>
    %493 = arith.mulf %491, %492 : vector<1x128xf32>
    %494 = vector.broadcast %493 : vector<1x128xf32> to vector<8x128xf32>
    %495 = arith.mulf %494, %488 : vector<8x128xf32>
    %496 = arith.addf %481, %495 : vector<8x128xf32>
    %497 = vector.extract_strided_slice %422 {offsets = [4, 0], sizes = [1, 128], strides = [1, 1]} : vector<8x128xf32> to vector<1x128xf32>
    %498 = vector.broadcast %497 : vector<1x128xf32> to vector<8x128xf32>
    %499 = arith.mulf %498, %423 : vector<8x128xf32>
    %500 = vector.extract_strided_slice %435 {offsets = [4, 0], sizes = [1, 128], strides = [1, 1]} : vector<8x128xf32> to vector<1x128xf32>
    %501 = vector.broadcast %500 : vector<1x128xf32> to vector<8x128xf32>
    %502 = arith.subf %499, %501 : vector<8x128xf32>
    %503 = math.exp %502 : vector<8x128xf32>
    %cst_56 = arith.constant dense<0.000000e+00> : vector<128xf32>
    %504 = vector.multi_reduction <add>, %503, %cst_56 [0] : vector<8x128xf32> to vector<128xf32>
    %505 = vector.shape_cast %504 : vector<128xf32> to vector<1x128xf32>
    %506 = vector.extract_strided_slice %424 {offsets = [4, 0], sizes = [1, 128], strides = [1, 1]} : vector<8x128xf32> to vector<1x128xf32>
    %507 = tpu.reciprocal %505 {approx = true} : vector<1x128xf32> -> vector<1x128xf32>
    %508 = arith.mulf %506, %507 : vector<1x128xf32>
    %509 = vector.broadcast %508 : vector<1x128xf32> to vector<8x128xf32>
    %510 = arith.mulf %509, %503 : vector<8x128xf32>
    %511 = arith.addf %496, %510 : vector<8x128xf32>
    %512 = vector.extract_strided_slice %422 {offsets = [5, 0], sizes = [1, 128], strides = [1, 1]} : vector<8x128xf32> to vector<1x128xf32>
    %513 = vector.broadcast %512 : vector<1x128xf32> to vector<8x128xf32>
    %514 = arith.mulf %513, %423 : vector<8x128xf32>
    %515 = vector.extract_strided_slice %435 {offsets = [5, 0], sizes = [1, 128], strides = [1, 1]} : vector<8x128xf32> to vector<1x128xf32>
    %516 = vector.broadcast %515 : vector<1x128xf32> to vector<8x128xf32>
    %517 = arith.subf %514, %516 : vector<8x128xf32>
    %518 = math.exp %517 : vector<8x128xf32>
    %cst_57 = arith.constant dense<0.000000e+00> : vector<128xf32>
    %519 = vector.multi_reduction <add>, %518, %cst_57 [0] : vector<8x128xf32> to vector<128xf32>
    %520 = vector.shape_cast %519 : vector<128xf32> to vector<1x128xf32>
    %521 = vector.extract_strided_slice %424 {offsets = [5, 0], sizes = [1, 128], strides = [1, 1]} : vector<8x128xf32> to vector<1x128xf32>
    %522 = tpu.reciprocal %520 {approx = true} : vector<1x128xf32> -> vector<1x128xf32>
    %523 = arith.mulf %521, %522 : vector<1x128xf32>
    %524 = vector.broadcast %523 : vector<1x128xf32> to vector<8x128xf32>
    %525 = arith.mulf %524, %518 : vector<8x128xf32>
    %526 = arith.addf %511, %525 : vector<8x128xf32>
    %527 = vector.extract_strided_slice %422 {offsets = [6, 0], sizes = [1, 128], strides = [1, 1]} : vector<8x128xf32> to vector<1x128xf32>
    %528 = vector.broadcast %527 : vector<1x128xf32> to vector<8x128xf32>
    %529 = arith.mulf %528, %423 : vector<8x128xf32>
    %530 = vector.extract_strided_slice %435 {offsets = [6, 0], sizes = [1, 128], strides = [1, 1]} : vector<8x128xf32> to vector<1x128xf32>
    %531 = vector.broadcast %530 : vector<1x128xf32> to vector<8x128xf32>
    %532 = arith.subf %529, %531 : vector<8x128xf32>
    %533 = math.exp %532 : vector<8x128xf32>
    %cst_58 = arith.constant dense<0.000000e+00> : vector<128xf32>
    %534 = vector.multi_reduction <add>, %533, %cst_58 [0] : vector<8x128xf32> to vector<128xf32>
    %535 = vector.shape_cast %534 : vector<128xf32> to vector<1x128xf32>
    %536 = vector.extract_strided_slice %424 {offsets = [6, 0], sizes = [1, 128], strides = [1, 1]} : vector<8x128xf32> to vector<1x128xf32>
    %537 = tpu.reciprocal %535 {approx = true} : vector<1x128xf32> -> vector<1x128xf32>
    %538 = arith.mulf %536, %537 : vector<1x128xf32>
    %539 = vector.broadcast %538 : vector<1x128xf32> to vector<8x128xf32>
    %540 = arith.mulf %539, %533 : vector<8x128xf32>
    %541 = arith.addf %526, %540 : vector<8x128xf32>
    %542 = vector.extract_strided_slice %422 {offsets = [7, 0], sizes = [1, 128], strides = [1, 1]} : vector<8x128xf32> to vector<1x128xf32>
    %543 = vector.broadcast %542 : vector<1x128xf32> to vector<8x128xf32>
    %544 = arith.mulf %543, %423 : vector<8x128xf32>
    %545 = vector.extract_strided_slice %435 {offsets = [7, 0], sizes = [1, 128], strides = [1, 1]} : vector<8x128xf32> to vector<1x128xf32>
    %546 = vector.broadcast %545 : vector<1x128xf32> to vector<8x128xf32>
    %547 = arith.subf %544, %546 : vector<8x128xf32>
    %548 = math.exp %547 : vector<8x128xf32>
    %cst_59 = arith.constant dense<0.000000e+00> : vector<128xf32>
    %549 = vector.multi_reduction <add>, %548, %cst_59 [0] : vector<8x128xf32> to vector<128xf32>
    %550 = vector.shape_cast %549 : vector<128xf32> to vector<1x128xf32>
    %551 = vector.extract_strided_slice %424 {offsets = [7, 0], sizes = [1, 128], strides = [1, 1]} : vector<8x128xf32> to vector<1x128xf32>
    %552 = tpu.reciprocal %550 {approx = true} : vector<1x128xf32> -> vector<1x128xf32>
    %553 = arith.mulf %551, %552 : vector<1x128xf32>
    %554 = vector.broadcast %553 : vector<1x128xf32> to vector<8x128xf32>
    %555 = arith.mulf %554, %548 : vector<8x128xf32>
    %556 = arith.addf %541, %555 : vector<8x128xf32>
    %c0_60 = arith.constant 0 : index
    %c0_61 = arith.constant 0 : index
    %557 = vector.load %arg6[%c0_60, %c0_61] : memref<10x8xf32, #tpu.memory_space<vmem>>, vector<10x8xf32>
    %cst_62 = arith.constant dense<0.000000e+00> : vector<10x128xf32>
    %558 = tpu.matmul %557, %556, %cst_62 {dimension_numbers = #tpu.dot_dimension_numbers<[1], [0], [0], [1], [0, 0, 1, 1], [], []>} : vector<10x8xf32>, vector<8x128xf32>, vector<10x128xf32> -> vector<10x128xf32>
    %c0_63 = arith.constant 0 : index
    %c0_64 = arith.constant 0 : index
    %559 = vector.load %arg7[%c0_63, %c0_64] : memref<10x1xf32, #tpu.memory_space<vmem>>, vector<10x1xf32>
    %560 = vector.broadcast %559 : vector<10x1xf32> to vector<10x128xf32>
    %561 = arith.addf %558, %560 : vector<10x128xf32>
    %cst_65 = arith.constant dense<0xFF800000> : vector<128xf32>
    %562 = vector.multi_reduction <maximumf>, %561, %cst_65 [0] : vector<10x128xf32> to vector<128xf32>
    %563 = vector.shape_cast %562 : vector<128xf32> to vector<1x128xf32>
    %564 = vector.broadcast %563 : vector<1x128xf32> to vector<10x128xf32>
    %565 = arith.subf %561, %564 : vector<10x128xf32>
    %566 = math.exp %565 : vector<10x128xf32>
    %cst_66 = arith.constant dense<0.000000e+00> : vector<128xf32>
    %567 = vector.multi_reduction <add>, %566, %cst_66 [0] : vector<10x128xf32> to vector<128xf32>
    %568 = vector.shape_cast %567 : vector<128xf32> to vector<1x128xf32>
    %569 = math.log %568 : vector<1x128xf32>
    %570 = vector.broadcast %569 : vector<1x128xf32> to vector<10x128xf32>
    %571 = arith.subf %565, %570 : vector<10x128xf32>
    %c0_67 = arith.constant 0 : index
    %c0_68 = arith.constant 0 : index
    %572 = vector.load %arg8[%c0_67, %c0_68] : memref<10x128xf32, #tpu.memory_space<vmem>>, vector<10x128xf32>
    tpu.vector_store %arg8[%c0_67, %c0_68], %571 {strides = array<i32>} : memref<10x128xf32, #tpu.memory_space<vmem>>, vector<10x128xf32>,
    return
  }
  func.func @transform_0(%arg0: i32) -> (i32, i32) {
    %c0_i32 = arith.constant 0 : i32
    %c0_i32_0 = arith.constant 0 : i32
    return %c0_i32, %arg0 : i32, i32
  }
  func.func @transform_1(%arg0: i32) -> (i32, i32) {
    %c0_i32 = arith.constant 0 : i32
    %c0_i32_0 = arith.constant 0 : i32
    %c0_i32_1 = arith.constant 0 : i32
    return %c0_i32, %c0_i32_0 : i32, i32
  }
  func.func @transform_2(%arg0: i32) -> (i32, i32) {
    %c0_i32 = arith.constant 0 : i32
    %c0_i32_0 = arith.constant 0 : i32
    %c0_i32_1 = arith.constant 0 : i32
    return %c0_i32, %c0_i32_0 : i32, i32
  }
  func.func @transform_3(%arg0: i32) -> (i32, i32) {
    %c0_i32 = arith.constant 0 : i32
    %c0_i32_0 = arith.constant 0 : i32
    %c0_i32_1 = arith.constant 0 : i32
    return %c0_i32, %c0_i32_0 : i32, i32
  }
  func.func @transform_4(%arg0: i32) -> (i32, i32) {
    %c0_i32 = arith.constant 0 : i32
    %c0_i32_0 = arith.constant 0 : i32
    %c0_i32_1 = arith.constant 0 : i32
    return %c0_i32, %c0_i32_0 : i32, i32
  }
  func.func @transform_5(%arg0: i32) -> (i32, i32) {
    %c0_i32 = arith.constant 0 : i32
    %c0_i32_0 = arith.constant 0 : i32
    %c0_i32_1 = arith.constant 0 : i32
    return %c0_i32, %c0_i32_0 : i32, i32
  }
  func.func @transform_6(%arg0: i32) -> (i32, i32) {
    %c0_i32 = arith.constant 0 : i32
    %c0_i32_0 = arith.constant 0 : i32
    %c0_i32_1 = arith.constant 0 : i32
    return %c0_i32, %c0_i32_0 : i32, i32
  }
  func.func @transform_7(%arg0: i32) -> (i32, i32) {
    %c0_i32 = arith.constant 0 : i32
    %c0_i32_0 = arith.constant 0 : i32
    return %c0_i32, %arg0 : i32, i32
  }
}

</mosaic_0001>

<bundles_post_ra>
// kernel: tpu_custom_call.1
= control target key start
LH: loop header
LB: loop body
LE: loop exit
PB: predicated region body
PF: predicated region fallthrough
CT: control target
= control target key end

     0   :  { %v1079_v2 = vmov 0   ;;  %s1399_s0 = inlined_call_operand.vmem [shape: f32[48,128], index: 0, kind: input, shape index: {}]   ;;  %s1400_s1 = inlined_call_operand.vmem [shape: f32[24,48], index: 1, kind: input, shape index: {}]   ;;  %s1401_s2 = inlined_call_operand.vmem [shape: f32[24,1], index: 2, kind: input, shape index: {}]   ;;  %s1402_s3 = inlined_call_operand.vmem [shape: f32[24,8], index: 3, kind: input, shape index: {}]   ;;  %s1403_s4 = inlined_call_operand.vmem [shape: f32[24,1], index: 4, kind: input, shape index: {}]   ;;  %s1404_s5 = inlined_call_operand.vmem [shape: f32[10,8], index: 5, kind: input, shape index: {}]   ;;  %s1405_s6 = inlined_call_operand.vmem [shape: f32[10,1], index: 6, kind: input, shape index: {}]   ;;  %s1406_s7 = inlined_call_operand.hbm [shape: f32[10,128], index: 7, kind: output, shape index: {}]  }
   0x1   :  { %v35_v0 = vld [vmem:[%s1399_s0 + $0x28] sm:$0xff]  ;;  %v34_v1 = vld [vmem:[%s1399_s0 + $0x20] sm:$0xff]  ;;  %916 = vset.pattern.permute.xlu0 %v1079_v2  ;;  %v33_v3 = vld [vmem:[%s1399_s0 + $0x18] sm:$0xff]  ;;  %917 = vset.pattern.permute.xlu1 %v1079_v2 }
   0x2   :  { %74 = vmatpush.msra.mxu0 %v35_v0  ;;  %v37_v4 = vld [vmem:[%s1401_s2 + $0x8] sm:$0xff]  ;;  %918 = vset.pattern.permute.xlu2 %v1079_v2  ;;  %v38_v5 = vld [vmem:[%s1401_s2 + $0x10] sm:$0xff] }
   0x3   :  { %46 = vperm.xlu0 %916, %v37_v4   ;;  %v32_v6 = vld [vmem:[%s1399_s0 + $0x10] sm:$0xff]  ;;  %51 = vperm.xlu1 %917, %v38_v5  }
   0x4   :  { %75 = vmatpush.msra.mxu0 %v34_v1 }
   0x6   :  { %76 = vmatpush.msra.mxu0 %v33_v3 }
   0x7   :  { %12 = vsyncpa [#allocation3], 0  ;;  %v31_v7 = vld [vmem:[%s1399_s0 + $0x8] sm:$0xff]  ;;  %v30_v8 = vld [vmem:[%s1399_s0] sm:$0xff]  ;;  %vm54_vm0 = vcmask 392192   ;;  %vm263_vm2 = vcmask 64512  }
   0x8   :  { %77 = vmatpush.msra.mxu0 %v32_v6  ;;  %v36_v9 = vld [vmem:[%s1401_s2] sm:$0xff]  ;;  %v94_v11 = vld [vmem:[%s1403_s4 + $0x8] sm:$0xff]  ;;  %v29_v15 = vld [vmem:[%s1400_s1 + $0x10] sm:$0xff]  ;;  %vm850_vm6 = vcmask 1041408   ;;  %s885_s19 = sshll.u32 %s1406_s7, 4  ;;  %s1081_s20 = smov 128   ;;  %s886_s19 = int_to_ptr.hbm [resolvable:$true] %s885_s19 }
   0x9   :  { %v27_v10 = vld [vmem:[%s1400_s1] sm:$0xff]  ;;  %v810_v12 = vld [vmem:[%s1405_s6 + $0x8] sm:$0x3]  ;;  %s1082_s21 = smov 8  }
   0xa   :  { %78 = vmatpush.msra.mxu0 %v31_v7  ;;  %v28_v13 = vld [vmem:[%s1400_s1 + $0x8] sm:$0xff]  ;;  %v809_v14 = vld [vmem:[%s1405_s6] sm:$0xff] }
   0xb   :  { %41 = vperm.xlu0 %916, %v36_v9   ;;  %255 = vperm.xlu1 %917, %v94_v11  }
   0xc   :  { %79 = vmatpush.msra.mxu0 %v30_v8 }
   0xd   :  { %897 = vmatmul.msk.f32.vlgmr.msra.gmra.mxu0 %vm54_vm0, %v27_v10 }
  0x13   :  { %818 = vperm.xlu0 %916, %v810_v12   ;;  %813 = vperm.xlu1 %917, %v809_v14  }
  0x15   :  { %898 = vmatmul.msk.f32.gmra.mxu0 %vm54_vm0, %v28_v13 }
  0x1d   :  { %899 = vmatmul.msk.f32.gmra.mxu0 %vm54_vm0, %v29_v15 }
  0x75   :  { %v47_v17 = vpop.permute.xlu0 %46 }
  0x7d   :  { %v42_v21 = vpop.permute.xlu0 %41 }
  0x8a   :  { %v81_v16 = vpop.f32.mrf.mxu0 }
  0x8b   :  { %v82_v26 = vadd.f32 %v81_v16, %v42_v21 }
  0x8d   :  { %vm108_vm1 = vcmp.ge.f32.partialorder %v82_v26, 0.0  ;;  %v112_v33 = vperm.slane %v82_v26, 0  ;;  %v129_v34 = vperm.slane %v82_v26, 1  ;;  %v146_v35 = vperm.slane %v82_v26, 2 }
  0x8e   :  { %v163_v36 = vperm.slane %v82_v26, 3  ;;  %v180_v37 = vperm.slane %v82_v26, 4  ;;  %v197_v38 = vperm.slane %v82_v26, 5  ;;  %v214_v41 = vperm.slane %v82_v26, 6 }
  0x8f   :  { %v231_v42 = vperm.slane %v82_v26, 7 }
  0x92   :  { %v84_v18 = vpop.f32.mrf.mxu0 }
  0x93   :  { %v85_v19 = vadd.f32 %v84_v18, %v47_v17 }
  0x95   :  { %v96_v20 = vrot.slane %v85_v19, 4  ;;  %v113_v43 = vmul.f32 %v112_v33, %v85_v19  ;;  %v130_v44 = vmul.f32 %v129_v34, %v85_v19  ;;  %v147_v45 = vmul.f32 %v146_v35, %v85_v19 }
  0x96   :  { %v164_v46 = vmul.f32 %v163_v36, %v85_v19  ;;  %v181_v48 = vmul.f32 %v180_v37, %v85_v19  ;;  %v198_v49 = vmul.f32 %v197_v38, %v85_v19  ;;  %v215_v50 = vmul.f32 %v214_v41, %v85_v19 }
  0x97   :  { %v97_v22 = vmax.f32 %v85_v19, %v96_v20  ;;  %v103_v23 = vmin.f32 %v85_v19, %v96_v20  ;;  %v232_v1 = vmul.f32 %v231_v42, %v85_v19 }
  0x99   :  { %v98_v24 = vrot.slane %v97_v22, 2  ;;  %v104_v25 = vrot.slane %v103_v23, 2 }
  0x9b   :  { %v99_v27 = vmax.f32 %v97_v22, %v98_v24  ;;  %v105_v28 = vmin.f32 %v103_v23, %v104_v25 }
  0x9d   :  { %v100_v29 = vrot.slane %v99_v27, 1  ;;  %v106_v30 = vrot.slane %v105_v28, 1 }
  0x9f   :  { %v101_v31 = vmax.f32 %v99_v27, %v100_v29  ;;  %v107_v32 = vmin.f32 %v105_v28, %v106_v30 }
  0xa1   :  { %v109_v39 = vmul.f32 %v101_v31, %v82_v26  ;;  %v110_v40 = vmul.f32 %v107_v32, %v82_v26 }
  0xa3   :  { %v111_v47 = vsel %vm108_vm1, %v109_v39, %v110_v40 }
  0xa4   :  { %v114_v51 = vperm.slane %v111_v47, 0  ;;  %v131_v52 = vperm.slane %v111_v47, 1  ;;  %v148_v53 = vperm.slane %v111_v47, 2  ;;  %v165_v54 = vperm.slane %v111_v47, 3 }
  0xa5   :  { %v182_v55 = vperm.slane %v111_v47, 4  ;;  %v199_v56 = vperm.slane %v111_v47, 5  ;;  %v216_v57 = vperm.slane %v111_v47, 6  ;;  %v233_v58 = vperm.slane %v111_v47, 7 }
  0xa6   :  { %v115_v59 = vsub.f32 %v113_v43, %v114_v51  ;;  %v132_v60 = vsub.f32 %v130_v44, %v131_v52  ;;  %v149_v61 = vsub.f32 %v147_v45, %v148_v53  ;;  %v166_v62 = vsub.f32 %v164_v46, %v165_v54 }
  0xa7   :  { %v183_v63 = vsub.f32 %v181_v48, %v182_v55  ;;  %v200_v0 = vsub.f32 %v198_v49, %v199_v56  ;;  %v217_v5 = vsub.f32 %v215_v50, %v216_v57  ;;  %v234_v7 = vsub.f32 %v232_v1, %v233_v58  ;;  %v87_v56 = vpop.f32.mrf.mxu0 }
  0xa8   :  { %v116_v2 = vmul.f32 1.442695, %v115_v59  ;;  %v133_v3 = vmul.f32 1.442695, %v132_v60  ;;  %v150_v4 = vmul.f32 1.442695, %v149_v61 }
  0xa9   :  { %v167_v6 = vmul.f32 1.442695, %v166_v62  ;;  %v184_v8 = vmul.f32 1.442695, %v183_v63  ;;  %v201_v9 = vmul.f32 1.442695, %v200_v0  ;;  %v52_v63 = vpop.permute.xlu1 %51 }
  0xaa   :  { %919 = vpow2.f32 %v116_v2  ;;  %v218_v10 = vmul.f32 1.442695, %v217_v5  ;;  %v235_v11 = vmul.f32 1.442695, %v234_v7  ;;  %v88_v2 = vadd.f32 %v87_v56, %v52_v63  ;;  %v93_v7 = vld [vmem:[%s1403_s4] sm:$0xff] }
  0xab   :  { %921 = vpow2.f32 %v133_v3  ;;  %250 = vperm.xlu2 %918, %v93_v7  }
  0xac   :  { %923 = vpow2.f32 %v150_v4 }
  0xad   :  { %925 = vpow2.f32 %v167_v6 }
  0xae   :  { %927 = vpow2.f32 %v184_v8 }
  0xaf   :  { %929 = vpow2.f32 %v201_v9 }
  0xb0   :  { %v1169_v12 = vpop.eup %919  ;;  %931 = vpow2.f32 %v218_v10 }
  0xb1   :  { %v1171_v13 = vpop.eup %921  ;;  %v118_v14 = vrot.slane %v1169_v12, 4  ;;  %933 = vpow2.f32 %v235_v11 }
  0xb2   :  { %v1174_v15 = vpop.eup %923  ;;  %v135_v16 = vrot.slane %v1171_v13, 4 }
  0xb3   :  { %v1177_v17 = vpop.eup %925  ;;  %v119_v18 = vadd.f32 %v1169_v12, %v118_v14  ;;  %v152_v19 = vrot.slane %v1174_v15, 4 }
  0xb4   :  { %v1181_v20 = vpop.eup %927  ;;  %v136_v21 = vadd.f32 %v1171_v13, %v135_v16  ;;  %v169_v22 = vrot.slane %v1177_v17, 4 }
  0xb5   :  { %v1185_v23 = vpop.eup %929  ;;  %v120_v24 = vrot.slane %v119_v18, 2  ;;  %v153_v25 = vadd.f32 %v1174_v15, %v152_v19  ;;  %v186_v26 = vrot.slane %v1181_v20, 4 }
  0xb6   :  { %v1189_v27 = vpop.eup %931  ;;  %v137_v28 = vrot.slane %v136_v21, 2  ;;  %v170_v29 = vadd.f32 %v1177_v17, %v169_v22  ;;  %v203_v30 = vrot.slane %v1185_v23, 4 }
  0xb7   :  { %v1193_v31 = vpop.eup %933  ;;  %v121_v32 = vadd.f32 %v120_v24, %v119_v18  ;;  %v154_v33 = vrot.slane %v153_v25, 2  ;;  %v187_v34 = vadd.f32 %v1181_v20, %v186_v26  ;;  %v220_v35 = vrot.slane %v1189_v27, 4 }
  0xb8   :  { %v138_v36 = vadd.f32 %v137_v28, %v136_v21  ;;  %v171_v37 = vrot.slane %v170_v29, 2  ;;  %v204_v38 = vadd.f32 %v1185_v23, %v203_v30  ;;  %v237_v39 = vrot.slane %v1193_v31, 4  ;;  %v95_v30 = vld [vmem:[%s1403_s4 + $0x10] sm:$0xff] }
  0xb9   :  { %v122_v40 = vrot.slane %v121_v32, 1  ;;  %v155_v41 = vadd.f32 %v154_v33, %v153_v25  ;;  %v188_v42 = vrot.slane %v187_v34, 2  ;;  %v221_v43 = vadd.f32 %v1189_v27, %v220_v35  ;;  %260 = vperm.xlu2 %918, %v95_v30  }
  0xba   :  { %v139_v44 = vrot.slane %v138_v36, 1  ;;  %v172_v45 = vadd.f32 %v171_v37, %v170_v29  ;;  %v205_v46 = vrot.slane %v204_v38, 2  ;;  %v238_v47 = vadd.f32 %v1193_v31, %v237_v39 }
  0xbb   :  { %v123_v48 = vadd.f32 %v122_v40, %v121_v32  ;;  %v156_v49 = vrot.slane %v155_v41, 1  ;;  %v189_v50 = vadd.f32 %v188_v42, %v187_v34  ;;  %v222_v51 = vrot.slane %v221_v43, 2 }
  0xbc   :  { %v140_v52 = vadd.f32 %v139_v44, %v138_v36  ;;  %v173_v53 = vrot.slane %v172_v45, 1  ;;  %v206_v54 = vadd.f32 %v205_v46, %v204_v38  ;;  %v239_v55 = vrot.slane %v238_v47, 2 }
  0xbd   :  { %935 = vrcp.f32 %v123_v48  ;;  %v157_v57 = vadd.f32 %v156_v49, %v155_v41  ;;  %v190_v58 = vrot.slane %v189_v50, 1  ;;  %v223_v59 = vadd.f32 %v222_v51, %v221_v43 }
  0xbe   :  { %937 = vrcp.f32 %v140_v52  ;;  %v174_v60 = vadd.f32 %v173_v53, %v172_v45  ;;  %v207_v61 = vrot.slane %v206_v54, 1  ;;  %v240_v62 = vadd.f32 %v239_v55, %v238_v47 }
  0xbf   :  { %939 = vrcp.f32 %v157_v57  ;;  %v191_v0 = vadd.f32 %v190_v58, %v189_v50  ;;  %v224_v1 = vrot.slane %v223_v59, 1 }
  0xc0   :  { %941 = vrcp.f32 %v174_v60  ;;  %v208_v3 = vadd.f32 %v207_v61, %v206_v54  ;;  %v241_v4 = vrot.slane %v240_v62, 1 }
  0xc1   :  { %943 = vrcp.f32 %v191_v0  ;;  %v225_v5 = vadd.f32 %v224_v1, %v223_v59 }
  0xc2   :  { %945 = vrcp.f32 %v208_v3  ;;  %v242_v6 = vadd.f32 %v241_v4, %v240_v62 }
  0xc3   :  { %v936_v8 = vpop.eup %935  ;;  %947 = vrcp.f32 %v225_v5 }
  0xc4   :  { %v938_v9 = vpop.eup %937  ;;  %v125_v10 = vmul.f32 %v936_v8, %v88_v2  ;;  %949 = vrcp.f32 %v242_v6 }
  0xc5   :  { %v940_v11 = vpop.eup %939  ;;  %v142_v14 = vmul.f32 %v938_v9, %v88_v2 }
  0xc6   :  { %v942_v16 = vpop.eup %941  ;;  %v126_v18 = vperm.slane %v125_v10, 0  ;;  %v159_v19 = vmul.f32 %v940_v11, %v88_v2 }
  0xc7   :  { %v944_v21 = vpop.eup %943  ;;  %v143_v22 = vperm.slane %v142_v14, 1  ;;  %v176_v24 = vmul.f32 %v942_v16, %v88_v2 }
  0xc8   :  { %v946_v25 = vpop.eup %945  ;;  %v127_v26 = vmul.f32 %v1169_v12, %v126_v18  ;;  %v160_v28 = vperm.slane %v159_v19, 2  ;;  %v193_v29 = vmul.f32 %v944_v21, %v88_v2 }
  0xc9   :  { %v948_v32 = vpop.eup %947  ;;  %v144_v33 = vmul.f32 %v1171_v13, %v143_v22  ;;  %v177_v34 = vperm.slane %v176_v24, 3  ;;  %v210_v35 = vmul.f32 %v946_v25, %v88_v2 }
  0xca   :  { %v950_v36 = vpop.eup %949  ;;  %v161_v38 = vmul.f32 %v1174_v15, %v160_v28  ;;  %v194_v39 = vperm.slane %v193_v29, 4  ;;  %v227_v40 = vmul.f32 %v948_v32, %v88_v2 }
  0xcb   :  { %v145_v37 = vadd.f32 %v144_v33, %v127_v26  ;;  %v178_v12 = vmul.f32 %v1177_v17, %v177_v34  ;;  %v211_v42 = vperm.slane %v210_v35, 5  ;;  %v244_v43 = vmul.f32 %v950_v36, %v88_v2  ;;  %v1218_v17 = vld [vmem:[%s1402_s3] sm:$0xff] }
  0xcc   :  { %v195_v45 = vmul.f32 %v1181_v20, %v194_v39  ;;  %v228_v46 = vperm.slane %v227_v40, 6  ;;  %v1223_v20 = vld [vmem:[%s1402_s3 + $0x10] sm:$0xff] }
  0xcd   :  { %v162_v41 = vadd.f32 %v161_v38, %v145_v37  ;;  %v212_v13 = vmul.f32 %v1185_v23, %v211_v42  ;;  %v245_v48 = vperm.slane %v244_v43, 7  ;;  %v1232_v23 = vld [vmem:[%s1402_s3 + $0x8] sm:$0xff] }
  0xce   :  { %v229_v50 = vmul.f32 %v1189_v27, %v228_v46 }
  0xcf   :  { %v179_v44 = vadd.f32 %v178_v12, %v162_v41  ;;  %v246_v51 = vmul.f32 %v1193_v31, %v245_v48  ;;  %v1236_v31 = vpop.permute.xlu1 %255 }
  0xd1   :  { %v196_v47 = vadd.f32 %v195_v45, %v179_v44 }
  0xd3   :  { %v213_v49 = vadd.f32 %v212_v13, %v196_v47 }
  0xd5   :  { %v230_v15 = vadd.f32 %v229_v50, %v213_v49 }
  0xd7   :  { %v247_v52 = vadd.f32 %v246_v51, %v230_v15 }
  0xd9   :  { %288 = vmatpush.msra.mxu1 %v247_v52  ;;  %911 = vmatpush.msra.mxu2 %v247_v52 }
  0xda   :  { %900 = vmatmul.msk.f32.vlgmr.msra.gmra.mxu1 %vm263_vm2, %v1218_v17  ;;  %902 = vmatmul.msk.f32.vlgmr.msra.gmra.mxu2 %vm263_vm2, %v1223_v20 }
  0xe2   :  { %901 = vmatmul.msk.f32.gmra.mxu1 %vm263_vm2, %v1232_v23 }
 0x105   :  { %v1239_v56 = vpop.permute.xlu2 %250 }
 0x157   :  { %v290_v27 = vpop.f32.mrf.mxu1 }
 0x158   :  { %v291_v61 = vadd.f32 %v290_v27, %v1239_v56 }
 0x15a   :  { %vm311_vm3 = vcmp.ge.f32.partialorder %v291_v61, 0.0  ;;  %v315_v4 = vperm.slane %v291_v61, 0  ;;  %v332_v5 = vperm.slane %v291_v61, 1  ;;  %v349_v6 = vperm.slane %v291_v61, 2 }
 0x15b   :  { %v366_v7 = vperm.slane %v291_v61, 3  ;;  %v383_v8 = vperm.slane %v291_v61, 4  ;;  %v400_v9 = vperm.slane %v291_v61, 5  ;;  %v417_v14 = vperm.slane %v291_v61, 6 }
 0x15c   :  { %v434_v16 = vperm.slane %v291_v61, 7 }
 0x15f   :  { %v293_v53 = vpop.f32.mrf.mxu1 }
 0x160   :  { %v294_v54 = vadd.f32 %v293_v53, %v1236_v31 }
 0x162   :  { %v299_v55 = vrot.slane %v294_v54, 4  ;;  %v316_v18 = vmul.f32 %v315_v4, %v294_v54  ;;  %v333_v19 = vmul.f32 %v332_v5, %v294_v54  ;;  %v350_v21 = vmul.f32 %v349_v6, %v294_v54 }
 0x163   :  { %v367_v22 = vmul.f32 %v366_v7, %v294_v54  ;;  %v384_v25 = vmul.f32 %v383_v8, %v294_v54  ;;  %v401_v26 = vmul.f32 %v400_v9, %v294_v54  ;;  %v418_v28 = vmul.f32 %v417_v14, %v294_v54 }
 0x164   :  { %v300_v57 = vmax.f32 %v294_v54, %v299_v55  ;;  %v306_v58 = vmin.f32 %v294_v54, %v299_v55  ;;  %v435_v43 = vmul.f32 %v434_v16, %v294_v54 }
 0x166   :  { %v301_v59 = vrot.slane %v300_v57, 2  ;;  %v307_v60 = vrot.slane %v306_v58, 2 }
 0x168   :  { %v302_v62 = vmax.f32 %v300_v57, %v301_v59  ;;  %v308_v63 = vmin.f32 %v306_v58, %v307_v60 }
 0x16a   :  { %v303_v0 = vrot.slane %v302_v62, 1  ;;  %v309_v1 = vrot.slane %v308_v63, 1 }
 0x16c   :  { %v304_v2 = vmax.f32 %v302_v62, %v303_v0  ;;  %v310_v3 = vmin.f32 %v308_v63, %v309_v1 }
 0x16e   :  { %v312_v10 = vmul.f32 %v304_v2, %v291_v61  ;;  %v313_v11 = vmul.f32 %v310_v3, %v291_v61 }
 0x170   :  { %v314_v24 = vsel %vm311_vm3, %v312_v10, %v313_v11 }
 0x171   :  { %v317_v29 = vperm.slane %v314_v24, 0  ;;  %v334_v30 = vperm.slane %v314_v24, 1  ;;  %v351_v32 = vperm.slane %v314_v24, 2  ;;  %v368_v33 = vperm.slane %v314_v24, 3 }
 0x172   :  { %v385_v34 = vperm.slane %v314_v24, 4  ;;  %v402_v35 = vperm.slane %v314_v24, 5  ;;  %v419_v36 = vperm.slane %v314_v24, 6  ;;  %v436_v37 = vperm.slane %v314_v24, 7 }
 0x173   :  { %v318_v38 = vsub.f32 %v316_v18, %v317_v29  ;;  %v335_v39 = vsub.f32 %v333_v19, %v334_v30  ;;  %v352_v40 = vsub.f32 %v350_v21, %v351_v32  ;;  %v369_v41 = vsub.f32 %v367_v22, %v368_v33 }
 0x174   :  { %v386_v12 = vsub.f32 %v384_v25, %v385_v34  ;;  %v403_v42 = vsub.f32 %v401_v26, %v402_v35  ;;  %v420_v47 = vsub.f32 %v418_v28, %v419_v36  ;;  %v437_v48 = vsub.f32 %v435_v43, %v436_v37 }
 0x175   :  { %v319_v44 = vmul.f32 1.442695, %v318_v38  ;;  %v336_v45 = vmul.f32 1.442695, %v335_v39  ;;  %v353_v46 = vmul.f32 1.442695, %v352_v40 }
 0x176   :  { %v370_v13 = vmul.f32 1.442695, %v369_v41  ;;  %v387_v49 = vmul.f32 1.442695, %v386_v12  ;;  %v404_v50 = vmul.f32 1.442695, %v403_v42 }
 0x177   :  { %951 = vpow2.f32 %v319_v44  ;;  %v421_v15 = vmul.f32 1.442695, %v420_v47  ;;  %v438_v51 = vmul.f32 1.442695, %v437_v48 }
 0x178   :  { %953 = vpow2.f32 %v336_v45  ;;  %v1275_v45 = vpop.permute.xlu2 %260 }
 0x179   :  { %955 = vpow2.f32 %v353_v46  ;;  %v296_v46 = vpop.f32.mrf.mxu2 }
 0x17a   :  { %957 = vpow2.f32 %v370_v13 }
 0x17b   :  { %959 = vpow2.f32 %v387_v49 }
 0x17c   :  { %961 = vpow2.f32 %v404_v50 }
 0x17d   :  { %v1243_v52 = vpop.eup %951  ;;  %963 = vpow2.f32 %v421_v15  ;;  %v297_v15 = vadd.f32 %v296_v46, %v1275_v45 }
 0x17e   :  { %v1245_v27 = vpop.eup %953  ;;  %v321_v53 = vrot.slane %v1243_v52, 4  ;;  %965 = vpow2.f32 %v438_v51 }
 0x17f   :  { %v1248_v54 = vpop.eup %955  ;;  %v338_v55 = vrot.slane %v1245_v27, 4 }
 0x180   :  { %v1251_v57 = vpop.eup %957  ;;  %v322_v58 = vadd.f32 %v1243_v52, %v321_v53  ;;  %v355_v59 = vrot.slane %v1248_v54, 4 }
 0x181   :  { %v1255_v60 = vpop.eup %959  ;;  %v339_v61 = vadd.f32 %v1245_v27, %v338_v55  ;;  %v372_v62 = vrot.slane %v1251_v57, 4 }
 0x182   :  { %v1259_v63 = vpop.eup %961  ;;  %v323_v0 = vrot.slane %v322_v58, 2  ;;  %v356_v1 = vadd.f32 %v1248_v54, %v355_v59  ;;  %v389_v2 = vrot.slane %v1255_v60, 4 }
 0x183   :  { %v1263_v3 = vpop.eup %963  ;;  %v340_v4 = vrot.slane %v339_v61, 2  ;;  %v373_v5 = vadd.f32 %v1251_v57, %v372_v62  ;;  %v406_v6 = vrot.slane %v1259_v63, 4 }
 0x184   :  { %v1267_v7 = vpop.eup %965  ;;  %v324_v8 = vadd.f32 %v323_v0, %v322_v58  ;;  %v357_v9 = vrot.slane %v356_v1, 2  ;;  %v390_v10 = vadd.f32 %v1255_v60, %v389_v2  ;;  %v423_v11 = vrot.slane %v1263_v3, 4 }
 0x185   :  { %v341_v14 = vadd.f32 %v340_v4, %v339_v61  ;;  %v374_v16 = vrot.slane %v373_v5, 2  ;;  %v407_v18 = vadd.f32 %v1259_v63, %v406_v6  ;;  %v440_v19 = vrot.slane %v1267_v7, 4 }
 0x186   :  { %v325_v21 = vrot.slane %v324_v8, 1  ;;  %v358_v22 = vadd.f32 %v357_v9, %v356_v1  ;;  %v391_v24 = vrot.slane %v390_v10, 2  ;;  %v424_v25 = vadd.f32 %v1263_v3, %v423_v11 }
 0x187   :  { %v342_v26 = vrot.slane %v341_v14, 1  ;;  %v375_v28 = vadd.f32 %v374_v16, %v373_v5  ;;  %v408_v29 = vrot.slane %v407_v18, 2  ;;  %v441_v30 = vadd.f32 %v1267_v7, %v440_v19 }
 0x188   :  { %v326_v32 = vadd.f32 %v325_v21, %v324_v8  ;;  %v359_v33 = vrot.slane %v358_v22, 1  ;;  %v392_v34 = vadd.f32 %v391_v24, %v390_v10  ;;  %v425_v35 = vrot.slane %v424_v25, 2 }
 0x189   :  { %v343_v36 = vadd.f32 %v342_v26, %v341_v14  ;;  %v376_v37 = vrot.slane %v375_v28, 1  ;;  %v409_v38 = vadd.f32 %v408_v29, %v407_v18  ;;  %v442_v39 = vrot.slane %v441_v30, 2 }
 0x18a   :  { %967 = vrcp.f32 %v326_v32  ;;  %v360_v40 = vadd.f32 %v359_v33, %v358_v22  ;;  %v393_v41 = vrot.slane %v392_v34, 1  ;;  %v426_v12 = vadd.f32 %v425_v35, %v424_v25 }
 0x18b   :  { %969 = vrcp.f32 %v343_v36  ;;  %v377_v42 = vadd.f32 %v376_v37, %v375_v28  ;;  %v410_v43 = vrot.slane %v409_v38, 1  ;;  %v443_v44 = vadd.f32 %v442_v39, %v441_v30 }
 0x18c   :  { %971 = vrcp.f32 %v360_v40  ;;  %v394_v47 = vadd.f32 %v393_v41, %v392_v34  ;;  %v427_v13 = vrot.slane %v426_v12, 1 }
 0x18d   :  { %973 = vrcp.f32 %v377_v42  ;;  %v411_v48 = vadd.f32 %v410_v43, %v409_v38  ;;  %v444_v49 = vrot.slane %v443_v44, 1 }
 0x18e   :  { %975 = vrcp.f32 %v394_v47  ;;  %v428_v50 = vadd.f32 %v427_v13, %v426_v12 }
 0x18f   :  { %977 = vrcp.f32 %v411_v48  ;;  %v445_v51 = vadd.f32 %v444_v49, %v443_v44 }
 0x190   :  { %v968_v53 = vpop.eup %967  ;;  %979 = vrcp.f32 %v428_v50 }
 0x191   :  { %v970_v55 = vpop.eup %969  ;;  %v328_v58 = vmul.f32 %v968_v53, %v297_v15  ;;  %981 = vrcp.f32 %v445_v51 }
 0x192   :  { %v972_v59 = vpop.eup %971  ;;  %v345_v61 = vmul.f32 %v970_v55, %v297_v15 }
 0x193   :  { %v974_v62 = vpop.eup %973  ;;  %v329_v0 = vperm.slane %v328_v58, 0  ;;  %v362_v1 = vmul.f32 %v972_v59, %v297_v15 }
 0x194   :  { %v976_v2 = vpop.eup %975  ;;  %v346_v4 = vperm.slane %v345_v61, 1  ;;  %v379_v5 = vmul.f32 %v974_v62, %v297_v15 }
 0x195   :  { %v978_v6 = vpop.eup %977  ;;  %v330_v8 = vmul.f32 %v1243_v52, %v329_v0  ;;  %v363_v9 = vperm.slane %v362_v1, 2  ;;  %v396_v10 = vmul.f32 %v976_v2, %v297_v15 }
 0x196   :  { %v980_v11 = vpop.eup %979  ;;  %v347_v14 = vmul.f32 %v1245_v27, %v346_v4  ;;  %v380_v16 = vperm.slane %v379_v5, 3  ;;  %v413_v18 = vmul.f32 %v978_v6, %v297_v15 }
 0x197   :  { %v982_v19 = vpop.eup %981  ;;  %v364_v22 = vmul.f32 %v1248_v54, %v363_v9  ;;  %v397_v24 = vperm.slane %v396_v10, 4  ;;  %v430_v25 = vmul.f32 %v980_v11, %v297_v15 }
 0x198   :  { %v348_v21 = vadd.f32 %v347_v14, %v330_v8  ;;  %v381_v28 = vmul.f32 %v1251_v57, %v380_v16  ;;  %v414_v29 = vperm.slane %v413_v18, 5  ;;  %v447_v30 = vmul.f32 %v982_v19, %v297_v15 }
 0x199   :  { %v398_v52 = vmul.f32 %v1255_v60, %v397_v24  ;;  %v431_v33 = vperm.slane %v430_v25, 6 }
 0x19a   :  { %v365_v26 = vadd.f32 %v364_v22, %v348_v21  ;;  %v415_v27 = vmul.f32 %v1259_v63, %v414_v29  ;;  %v448_v35 = vperm.slane %v447_v30, 7 }
 0x19b   :  { %v432_v37 = vmul.f32 %v1263_v3, %v431_v33 }
 0x19c   :  { %v382_v32 = vadd.f32 %v381_v28, %v365_v26  ;;  %v449_v54 = vmul.f32 %v1267_v7, %v448_v35 }
 0x19e   :  { %v399_v34 = vadd.f32 %v398_v52, %v382_v32 }
 0x1a0   :  { %v416_v36 = vadd.f32 %v415_v27, %v399_v34 }
 0x1a2   :  { %v433_v38 = vadd.f32 %v432_v37, %v416_v36 }
 0x1a4   :  { %v450_v39 = vadd.f32 %v449_v54, %v433_v38 }
 0x1a6   :  { %466 = vmatpush.msrb.mxu2 %v450_v39 }
 0x1a7   :  { %903 = vmatmul.msk.f32.vlgmr.msrb.gmra.mxu2 %vm263_vm2, %v1218_v17 }
 0x1af   :  { %904 = vmatmul.msk.f32.gmra.mxu2 %vm263_vm2, %v1232_v23 }
 0x1b7   :  { %905 = vmatmul.msk.f32.gmra.mxu2 %vm263_vm2, %v1223_v20 }
 0x22a   :  { %v468_v57 = vpop.f32.mrf.mxu2 }
 0x22b   :  { %v469_v42 = vadd.f32 %v468_v57, %v1239_v56 }
 0x22d   :  { %vm489_vm4 = vcmp.ge.f32.partialorder %v469_v42, 0.0  ;;  %v493_v49 = vperm.slane %v469_v42, 0  ;;  %v510_v50 = vperm.slane %v469_v42, 1  ;;  %v527_v15 = vperm.slane %v469_v42, 2 }
 0x22e   :  { %v544_v51 = vperm.slane %v469_v42, 3  ;;  %v561_v53 = vperm.slane %v469_v42, 4  ;;  %v578_v55 = vperm.slane %v469_v42, 5  ;;  %v595_v61 = vperm.slane %v469_v42, 6 }
 0x22f   :  { %v612_v62 = vperm.slane %v469_v42, 7 }
 0x232   :  { %v471_v60 = vpop.f32.mrf.mxu2 }
 0x233   :  { %v472_v63 = vadd.f32 %v471_v60, %v1236_v31 }
 0x235   :  { %v477_v40 = vrot.slane %v472_v63, 4  ;;  %v494_v0 = vmul.f32 %v493_v49, %v472_v63  ;;  %v511_v1 = vmul.f32 %v510_v50, %v472_v63  ;;  %v528_v2 = vmul.f32 %v527_v15, %v472_v63 }
 0x236   :  { %v545_v4 = vmul.f32 %v544_v51, %v472_v63  ;;  %v562_v6 = vmul.f32 %v561_v53, %v472_v63  ;;  %v579_v8 = vmul.f32 %v578_v55, %v472_v63  ;;  %v596_v9 = vmul.f32 %v595_v61, %v472_v63 }
 0x237   :  { %v478_v3 = vmax.f32 %v472_v63, %v477_v40  ;;  %v484_v41 = vmin.f32 %v472_v63, %v477_v40  ;;  %v613_v32 = vmul.f32 %v612_v62, %v472_v63 }
 0x239   :  { %v479_v12 = vrot.slane %v478_v3, 2  ;;  %v485_v7 = vrot.slane %v484_v41, 2 }
 0x23b   :  { %v480_v43 = vmax.f32 %v478_v3, %v479_v12  ;;  %v486_v44 = vmin.f32 %v484_v41, %v485_v7 }
 0x23d   :  { %v481_v46 = vrot.slane %v480_v43, 1  ;;  %v487_v47 = vrot.slane %v486_v44, 1 }
 0x23f   :  { %v482_v13 = vmax.f32 %v480_v43, %v481_v46  ;;  %v488_v48 = vmin.f32 %v486_v44, %v487_v47 }
 0x241   :  { %v490_v58 = vmul.f32 %v482_v13, %v469_v42  ;;  %v491_v59 = vmul.f32 %v488_v48, %v469_v42 }
 0x243   :  { %v492_v5 = vsel %vm489_vm4, %v490_v58, %v491_v59 }
 0x244   :  { %v495_v10 = vperm.slane %v492_v5, 0  ;;  %v512_v11 = vperm.slane %v492_v5, 1  ;;  %v529_v14 = vperm.slane %v492_v5, 2  ;;  %v546_v16 = vperm.slane %v492_v5, 3 }
 0x245   :  { %v563_v18 = vperm.slane %v492_v5, 4  ;;  %v580_v19 = vperm.slane %v492_v5, 5  ;;  %v597_v21 = vperm.slane %v492_v5, 6  ;;  %v614_v22 = vperm.slane %v492_v5, 7 }
 0x246   :  { %v496_v24 = vsub.f32 %v494_v0, %v495_v10  ;;  %v513_v25 = vsub.f32 %v511_v1, %v512_v11  ;;  %v530_v26 = vsub.f32 %v528_v2, %v529_v14  ;;  %v547_v28 = vsub.f32 %v545_v4, %v546_v16 }
 0x247   :  { %v564_v29 = vsub.f32 %v562_v6, %v563_v18  ;;  %v581_v30 = vsub.f32 %v579_v8, %v580_v19  ;;  %v598_v27 = vsub.f32 %v596_v9, %v597_v21  ;;  %v615_v36 = vsub.f32 %v613_v32, %v614_v22 }
 0x248   :  { %v497_v52 = vmul.f32 1.442695, %v496_v24  ;;  %v514_v33 = vmul.f32 1.442695, %v513_v25  ;;  %v531_v34 = vmul.f32 1.442695, %v530_v26 }
 0x249   :  { %v548_v35 = vmul.f32 1.442695, %v547_v28  ;;  %v565_v37 = vmul.f32 1.442695, %v564_v29  ;;  %v582_v38 = vmul.f32 1.442695, %v581_v30 }
 0x24a   :  { %983 = vpow2.f32 %v497_v52  ;;  %v599_v54 = vmul.f32 1.442695, %v598_v27  ;;  %v616_v39 = vmul.f32 1.442695, %v615_v36 }
 0x24b   :  { %985 = vpow2.f32 %v514_v33 }
 0x24c   :  { %987 = vpow2.f32 %v531_v34  ;;  %v474_v34 = vpop.f32.mrf.mxu2 }
 0x24d   :  { %989 = vpow2.f32 %v548_v35 }
 0x24e   :  { %991 = vpow2.f32 %v565_v37 }
 0x24f   :  { %993 = vpow2.f32 %v582_v38 }
 0x250   :  { %v1295_v57 = vpop.eup %983  ;;  %995 = vpow2.f32 %v599_v54  ;;  %v475_v54 = vadd.f32 %v474_v34, %v1275_v45 }
 0x251   :  { %v1297_v60 = vpop.eup %985  ;;  %v499_v63 = vrot.slane %v1295_v57, 4  ;;  %997 = vpow2.f32 %v616_v39 }
 0x252   :  { %v1300_v40 = vpop.eup %987  ;;  %v516_v3 = vrot.slane %v1297_v60, 4 }
 0x253   :  { %v1303_v41 = vpop.eup %989  ;;  %v500_v12 = vadd.f32 %v1295_v57, %v499_v63  ;;  %v533_v7 = vrot.slane %v1300_v40, 4 }
 0x254   :  { %v1307_v42 = vpop.eup %991  ;;  %v517_v43 = vadd.f32 %v1297_v60, %v516_v3  ;;  %v550_v44 = vrot.slane %v1303_v41, 4 }
 0x255   :  { %v1311_v46 = vpop.eup %993  ;;  %v501_v47 = vrot.slane %v500_v12, 2  ;;  %v534_v13 = vadd.f32 %v1300_v40, %v533_v7  ;;  %v567_v48 = vrot.slane %v1307_v42, 4 }
 0x256   :  { %v1315_v49 = vpop.eup %995  ;;  %v518_v50 = vrot.slane %v517_v43, 2  ;;  %v551_v15 = vadd.f32 %v1303_v41, %v550_v44  ;;  %v584_v51 = vrot.slane %v1311_v46, 4 }
 0x257   :  { %v1319_v53 = vpop.eup %997  ;;  %v502_v55 = vadd.f32 %v501_v47, %v500_v12  ;;  %v535_v58 = vrot.slane %v534_v13, 2  ;;  %v568_v59 = vadd.f32 %v1307_v42, %v567_v48  ;;  %v601_v61 = vrot.slane %v1315_v49, 4 }
 0x258   :  { %v519_v62 = vadd.f32 %v518_v50, %v517_v43  ;;  %v552_v0 = vrot.slane %v551_v15, 2  ;;  %v585_v1 = vadd.f32 %v1311_v46, %v584_v51  ;;  %v618_v2 = vrot.slane %v1319_v53, 4 }
 0x259   :  { %v503_v4 = vrot.slane %v502_v55, 1  ;;  %v536_v5 = vadd.f32 %v535_v58, %v534_v13  ;;  %v569_v6 = vrot.slane %v568_v59, 2  ;;  %v602_v8 = vadd.f32 %v1315_v49, %v601_v61 }
 0x25a   :  { %v520_v9 = vrot.slane %v519_v62, 1  ;;  %v553_v10 = vadd.f32 %v552_v0, %v551_v15  ;;  %v586_v11 = vrot.slane %v585_v1, 2  ;;  %v619_v14 = vadd.f32 %v1319_v53, %v618_v2 }
 0x25b   :  { %v504_v16 = vadd.f32 %v503_v4, %v502_v55  ;;  %v537_v18 = vrot.slane %v536_v5, 1  ;;  %v570_v19 = vadd.f32 %v569_v6, %v568_v59  ;;  %v603_v21 = vrot.slane %v602_v8, 2 }
 0x25c   :  { %v521_v22 = vadd.f32 %v520_v9, %v519_v62  ;;  %v554_v24 = vrot.slane %v553_v10, 1  ;;  %v587_v25 = vadd.f32 %v586_v11, %v585_v1  ;;  %v620_v26 = vrot.slane %v619_v14, 2 }
 0x25d   :  { %999 = vrcp.f32 %v504_v16  ;;  %v538_v28 = vadd.f32 %v537_v18, %v536_v5  ;;  %v571_v29 = vrot.slane %v570_v19, 1  ;;  %v604_v30 = vadd.f32 %v603_v21, %v602_v8 }
 0x25e   :  { %1001 = vrcp.f32 %v521_v22  ;;  %v555_v32 = vadd.f32 %v554_v24, %v553_v10  ;;  %v588_v52 = vrot.slane %v587_v25, 1  ;;  %v621_v33 = vadd.f32 %v620_v26, %v619_v14 }
 0x25f   :  { %1003 = vrcp.f32 %v538_v28  ;;  %v572_v27 = vadd.f32 %v571_v29, %v570_v19  ;;  %v605_v35 = vrot.slane %v604_v30, 1 }
 0x260   :  { %1005 = vrcp.f32 %v555_v32  ;;  %v589_v36 = vadd.f32 %v588_v52, %v587_v25  ;;  %v622_v37 = vrot.slane %v621_v33, 1 }
 0x261   :  { %1007 = vrcp.f32 %v572_v27  ;;  %v606_v38 = vadd.f32 %v605_v35, %v604_v30 }
 0x262   :  { %1009 = vrcp.f32 %v589_v36  ;;  %v623_v39 = vadd.f32 %v622_v37, %v621_v33 }
 0x263   :  { %v1000_v63 = vpop.eup %999  ;;  %1011 = vrcp.f32 %v606_v38 }
 0x264   :  { %v1002_v3 = vpop.eup %1001  ;;  %v506_v12 = vmul.f32 %v1000_v63, %v475_v54  ;;  %1013 = vrcp.f32 %v623_v39 }
 0x265   :  { %v1004_v7 = vpop.eup %1003  ;;  %v523_v43 = vmul.f32 %v1002_v3, %v475_v54 }
 0x266   :  { %v1006_v44 = vpop.eup %1005  ;;  %v507_v47 = vperm.slane %v506_v12, 0  ;;  %v540_v13 = vmul.f32 %v1004_v7, %v475_v54 }
 0x267   :  { %v1008_v48 = vpop.eup %1007  ;;  %v524_v50 = vperm.slane %v523_v43, 1  ;;  %v557_v15 = vmul.f32 %v1006_v44, %v475_v54 }
 0x268   :  { %v1010_v51 = vpop.eup %1009  ;;  %v508_v55 = vmul.f32 %v1295_v57, %v507_v47  ;;  %v541_v58 = vperm.slane %v540_v13, 2  ;;  %v574_v59 = vmul.f32 %v1008_v48, %v475_v54 }
 0x269   :  { %v1012_v61 = vpop.eup %1011  ;;  %v525_v62 = vmul.f32 %v1297_v60, %v524_v50  ;;  %v558_v0 = vperm.slane %v557_v15, 3  ;;  %v591_v1 = vmul.f32 %v1010_v51, %v475_v54 }
 0x26a   :  { %v1014_v2 = vpop.eup %1013  ;;  %v542_v5 = vmul.f32 %v1300_v40, %v541_v58  ;;  %v575_v6 = vperm.slane %v574_v59, 4  ;;  %v608_v8 = vmul.f32 %v1012_v61, %v475_v54 }
 0x26b   :  { %v526_v4 = vadd.f32 %v525_v62, %v508_v55  ;;  %v559_v10 = vmul.f32 %v1303_v41, %v558_v0  ;;  %v592_v11 = vperm.slane %v591_v1, 5  ;;  %v625_v14 = vmul.f32 %v1014_v2, %v475_v54 }
 0x26c   :  { %v576_v57 = vmul.f32 %v1307_v42, %v575_v6  ;;  %v609_v18 = vperm.slane %v608_v8, 6 }
 0x26d   :  { %v543_v9 = vadd.f32 %v542_v5, %v526_v4  ;;  %v593_v60 = vmul.f32 %v1311_v46, %v592_v11  ;;  %v626_v21 = vperm.slane %v625_v14, 7 }
 0x26e   :  { %v610_v24 = vmul.f32 %v1315_v49, %v609_v18 }
 0x26f   :  { %v560_v16 = vadd.f32 %v559_v10, %v543_v9  ;;  %v627_v40 = vmul.f32 %v1319_v53, %v626_v21 }
 0x271   :  { %v577_v19 = vadd.f32 %v576_v57, %v560_v16 }
 0x273   :  { %v594_v22 = vadd.f32 %v593_v60, %v577_v19 }
 0x275   :  { %v611_v25 = vadd.f32 %v610_v24, %v594_v22 }
 0x277   :  { %v628_v26 = vadd.f32 %v627_v40, %v611_v25 }
 0x279   :  { %644 = vmatpush.msra.mxu3 %v628_v26 }
 0x27a   :  { %906 = vmatmul.msk.f32.vlgmr.msra.gmra.mxu3 %vm263_vm2, %v1218_v17 }
 0x282   :  { %907 = vmatmul.msk.f32.gmra.mxu3 %vm263_vm2, %v1232_v23 }
 0x28a   :  { %908 = vmatmul.msk.f32.gmra.mxu3 %vm263_vm2, %v1223_v20 }
 0x2fd   :  { %v646_v41 = vpop.f32.mrf.mxu3 }
 0x2fe   :  { %v647_v32 = vadd.f32 %v646_v41, %v1239_v56 }
 0x300   :  { %vm667_vm5 = vcmp.ge.f32.partialorder %v647_v32, 0.0  ;;  %v671_v35 = vperm.slane %v647_v32, 0  ;;  %v688_v20 = vperm.slane %v647_v32, 1  ;;  %v705_v36 = vperm.slane %v647_v32, 2 }
 0x301   :  { %v722_v37 = vperm.slane %v647_v32, 3  ;;  %v739_v38 = vperm.slane %v647_v32, 4  ;;  %v773_v63 = vperm.slane %v647_v32, 6  ;;  %v790_v3 = vperm.slane %v647_v32, 7 }
 0x305   :  { %v649_v42 = vpop.f32.mrf.mxu3 }
 0x306   :  { %v650_v46 = vadd.f32 %v649_v42, %v1236_v31  ;;  %v756_v31 = vperm.slane %v647_v32, 5 }
 0x308   :  { %v655_v28 = vrot.slane %v650_v46, 4  ;;  %v672_v12 = vmul.f32 %v671_v35, %v650_v46  ;;  %v689_v7 = vmul.f32 %v688_v20, %v650_v46  ;;  %v706_v56 = vmul.f32 %v705_v36, %v650_v46 }
 0x309   :  { %v723_v43 = vmul.f32 %v722_v37, %v650_v46  ;;  %v740_v47 = vmul.f32 %v739_v38, %v650_v46  ;;  %v757_v13 = vmul.f32 %v756_v31, %v650_v46  ;;  %v774_v48 = vmul.f32 %v773_v63, %v650_v46 }
 0x30a   :  { %v656_v49 = vmax.f32 %v650_v46, %v655_v28  ;;  %v662_v29 = vmin.f32 %v650_v46, %v655_v28  ;;  %v791_v8 = vmul.f32 %v790_v3, %v650_v46 }
 0x30c   :  { %v657_v30 = vrot.slane %v656_v49, 2  ;;  %v663_v53 = vrot.slane %v662_v29, 2 }
 0x30e   :  { %v658_v52 = vmax.f32 %v656_v49, %v657_v30  ;;  %v664_v33 = vmin.f32 %v662_v29, %v663_v53 }
 0x310   :  { %v659_v17 = vrot.slane %v658_v52, 1  ;;  %v665_v34 = vrot.slane %v664_v33, 1 }
 0x312   :  { %v660_v23 = vmax.f32 %v658_v52, %v659_v17  ;;  %v666_v27 = vmin.f32 %v664_v33, %v665_v34 }
 0x314   :  { %v668_v54 = vmul.f32 %v660_v23, %v647_v32  ;;  %v669_v39 = vmul.f32 %v666_v27, %v647_v32 }
 0x316   :  { %v670_v44 = vsel %vm667_vm5, %v668_v54, %v669_v39 }
 0x317   :  { %v673_v50 = vperm.slane %v670_v44, 0  ;;  %v690_v15 = vperm.slane %v670_v44, 1  ;;  %v707_v51 = vperm.slane %v670_v44, 2  ;;  %v724_v55 = vperm.slane %v670_v44, 3 }
 0x318   :  { %v741_v58 = vperm.slane %v670_v44, 4  ;;  %v758_v59 = vperm.slane %v670_v44, 5  ;;  %v775_v61 = vperm.slane %v670_v44, 6  ;;  %v792_v62 = vperm.slane %v670_v44, 7 }
 0x319   :  { %v674_v0 = vsub.f32 %v672_v12, %v673_v50  ;;  %v691_v1 = vsub.f32 %v689_v7, %v690_v15  ;;  %v708_v2 = vsub.f32 %v706_v56, %v707_v51  ;;  %v725_v4 = vsub.f32 %v723_v43, %v724_v55 }
 0x31a   :  { %v742_v5 = vsub.f32 %v740_v47, %v741_v58  ;;  %v759_v6 = vsub.f32 %v757_v13, %v758_v59  ;;  %v776_v14 = vsub.f32 %v774_v48, %v775_v61  ;;  %v793_v57 = vsub.f32 %v791_v8, %v792_v62 }
 0x31b   :  { %v675_v9 = vmul.f32 1.442695, %v674_v0  ;;  %v692_v10 = vmul.f32 1.442695, %v691_v1  ;;  %v709_v11 = vmul.f32 1.442695, %v708_v2 }
 0x31c   :  { %v726_v16 = vmul.f32 1.442695, %v725_v4  ;;  %v743_v18 = vmul.f32 1.442695, %v742_v5  ;;  %v760_v19 = vmul.f32 1.442695, %v759_v6  ;;  %v652_v5 = vpop.f32.mrf.mxu3 }
 0x31d   :  { %1015 = vpow2.f32 %v675_v9  ;;  %v777_v60 = vmul.f32 1.442695, %v776_v14  ;;  %v794_v21 = vmul.f32 1.442695, %v793_v57  ;;  %v653_v14 = vadd.f32 %v652_v5, %v1275_v45 }
 0x31e   :  { %1017 = vpow2.f32 %v692_v10 }
 0x31f   :  { %1019 = vpow2.f32 %v709_v11 }
 0x320   :  { %1021 = vpow2.f32 %v726_v16 }
 0x321   :  { %1023 = vpow2.f32 %v743_v18 }
 0x322   :  { %1025 = vpow2.f32 %v760_v19 }
 0x323   :  { %v1345_v22 = vpop.eup %1015  ;;  %1027 = vpow2.f32 %v777_v60 }
 0x324   :  { %v1347_v24 = vpop.eup %1017  ;;  %v677_v25 = vrot.slane %v1345_v22, 4  ;;  %1029 = vpow2.f32 %v794_v21 }
 0x325   :  { %v1350_v40 = vpop.eup %1019  ;;  %v694_v26 = vrot.slane %v1347_v24, 4 }
 0x326   :  { %v1353_v41 = vpop.eup %1021  ;;  %v678_v42 = vadd.f32 %v1345_v22, %v677_v25  ;;  %v711_v46 = vrot.slane %v1350_v40, 4 }
 0x327   :  { %v1357_v28 = vpop.eup %1023  ;;  %v695_v49 = vadd.f32 %v1347_v24, %v694_v26  ;;  %v728_v29 = vrot.slane %v1353_v41, 4 }
 0x328   :  { %v1361_v30 = vpop.eup %1025  ;;  %v679_v53 = vrot.slane %v678_v42, 2  ;;  %v712_v32 = vadd.f32 %v1350_v40, %v711_v46  ;;  %v745_v52 = vrot.slane %v1357_v28, 4 }
 0x329   :  { %v1365_v33 = vpop.eup %1027  ;;  %v696_v17 = vrot.slane %v695_v49, 2  ;;  %v729_v34 = vadd.f32 %v1353_v41, %v728_v29  ;;  %v762_v23 = vrot.slane %v1361_v30, 4 }
 0x32a   :  { %v1369_v27 = vpop.eup %1029  ;;  %v680_v35 = vadd.f32 %v679_v53, %v678_v42  ;;  %v713_v20 = vrot.slane %v712_v32, 2  ;;  %v746_v36 = vadd.f32 %v1357_v28, %v745_v52  ;;  %v779_v37 = vrot.slane %v1365_v33, 4 }
 0x32b   :  { %v697_v38 = vadd.f32 %v696_v17, %v695_v49  ;;  %v730_v31 = vrot.slane %v729_v34, 2  ;;  %v763_v54 = vadd.f32 %v1361_v30, %v762_v23  ;;  %v796_v39 = vrot.slane %v1369_v27, 4 }
 0x32c   :  { %v681_v63 = vrot.slane %v680_v35, 1  ;;  %v714_v3 = vadd.f32 %v713_v20, %v712_v32  ;;  %v747_v12 = vrot.slane %v746_v36, 2  ;;  %v780_v7 = vadd.f32 %v1365_v33, %v779_v37 }
 0x32d   :  { %v698_v56 = vrot.slane %v697_v38, 1  ;;  %v731_v43 = vadd.f32 %v730_v31, %v729_v34  ;;  %v764_v44 = vrot.slane %v763_v54, 2  ;;  %v797_v47 = vadd.f32 %v1369_v27, %v796_v39 }
 0x32e   :  { %v682_v13 = vadd.f32 %v681_v63, %v680_v35  ;;  %v715_v48 = vrot.slane %v714_v3, 1  ;;  %v748_v50 = vadd.f32 %v747_v12, %v746_v36  ;;  %v781_v15 = vrot.slane %v780_v7, 2 }
 0x32f   :  { %v699_v51 = vadd.f32 %v698_v56, %v697_v38  ;;  %v732_v55 = vrot.slane %v731_v43, 1  ;;  %v765_v58 = vadd.f32 %v764_v44, %v763_v54  ;;  %v798_v59 = vrot.slane %v797_v47, 2 }
 0x330   :  { %1031 = vrcp.f32 %v682_v13  ;;  %v716_v61 = vadd.f32 %v715_v48, %v714_v3  ;;  %v749_v62 = vrot.slane %v748_v50, 1  ;;  %v782_v0 = vadd.f32 %v781_v15, %v780_v7  ;;  %v814_v15 = vpop.permute.xlu1 %813 }
 0x331   :  { %1033 = vrcp.f32 %v699_v51  ;;  %v733_v1 = vadd.f32 %v732_v55, %v731_v43  ;;  %v766_v2 = vrot.slane %v765_v58, 1  ;;  %v799_v4 = vadd.f32 %v798_v59, %v797_v47 }
 0x332   :  { %1035 = vrcp.f32 %v716_v61  ;;  %v750_v6 = vadd.f32 %v749_v62, %v748_v50  ;;  %v783_v8 = vrot.slane %v782_v0, 1  ;;  %v819_v50 = vpop.permute.xlu0 %818 }
 0x333   :  { %1037 = vrcp.f32 %v733_v1  ;;  %v767_v9 = vadd.f32 %v766_v2, %v765_v58  ;;  %v800_v10 = vrot.slane %v799_v4, 1 }
 0x334   :  { %1039 = vrcp.f32 %v750_v6  ;;  %v784_v11 = vadd.f32 %v783_v8, %v782_v0 }
 0x335   :  { %1041 = vrcp.f32 %v767_v9  ;;  %v801_v16 = vadd.f32 %v800_v10, %v799_v4 }
 0x336   :  { %v1032_v57 = vpop.eup %1031  ;;  %1043 = vrcp.f32 %v784_v11 }
 0x337   :  { %v1034_v18 = vpop.eup %1033  ;;  %v684_v19 = vmul.f32 %v1032_v57, %v653_v14  ;;  %1045 = vrcp.f32 %v801_v16 }
 0x338   :  { %v1036_v60 = vpop.eup %1035  ;;  %v701_v21 = vmul.f32 %v1034_v18, %v653_v14 }
 0x339   :  { %v1038_v25 = vpop.eup %1037  ;;  %v685_v26 = vperm.slane %v684_v19, 0  ;;  %v718_v42 = vmul.f32 %v1036_v60, %v653_v14 }
 0x33a   :  { %v1040_v46 = vpop.eup %1039  ;;  %v702_v49 = vperm.slane %v701_v21, 1  ;;  %v735_v29 = vmul.f32 %v1038_v25, %v653_v14 }
 0x33b   :  { %v1042_v53 = vpop.eup %1041  ;;  %v686_v32 = vmul.f32 %v1345_v22, %v685_v26  ;;  %v719_v52 = vperm.slane %v718_v42, 2  ;;  %v752_v45 = vmul.f32 %v1040_v46, %v653_v14 }
 0x33c   :  { %v1044_v17 = vpop.eup %1043  ;;  %v703_v34 = vmul.f32 %v1347_v24, %v702_v49  ;;  %v736_v23 = vperm.slane %v735_v29, 3  ;;  %v769_v35 = vmul.f32 %v1042_v53, %v653_v14 }
 0x33d   :  { %v1046_v20 = vpop.eup %1045  ;;  %v720_v37 = vmul.f32 %v1350_v40, %v719_v52  ;;  %v753_v38 = vperm.slane %v752_v45, 4  ;;  %v786_v31 = vmul.f32 %v1044_v17, %v653_v14 }
 0x33e   :  { %v704_v36 = vadd.f32 %v703_v34, %v686_v32  ;;  %v737_v39 = vmul.f32 %v1353_v41, %v736_v23  ;;  %v770_v63 = vperm.slane %v769_v35, 5  ;;  %v803_v3 = vmul.f32 %v1046_v20, %v653_v14  ;;  %v807_v41 = vld [vmem:[%s1404_s5] sm:$0xff] }
 0x33f   :  { %v754_v22 = vmul.f32 %v1357_v28, %v753_v38  ;;  %v787_v7 = vperm.slane %v786_v31, 6  ;;  %v808_v28 = vld [vmem:[%s1404_s5 + $0x8] sm:$0x3]  ;;  %s1080_s5 = smov [#allocation2]  }
 0x340   :  { %v721_v54 = vadd.f32 %v720_v37, %v704_v36  ;;  %v771_v24 = vmul.f32 %v1361_v30, %v770_v63  ;;  %v804_v43 = vperm.slane %v803_v3, 7  ;;  %s883_s16 = sshll.u32 %s1080_s5, 4  ;;  %s884_s16 = int_to_ptr.vmem [resolvable:$true] %s883_s16 }
 0x341   :  { %v788_v47 = vmul.f32 %v1365_v33, %v787_v7 }
 0x342   :  { %v738_v12 = vadd.f32 %v737_v39, %v721_v54  ;;  %v805_v40 = vmul.f32 %v1369_v27, %v804_v43 }
 0x344   :  { %v755_v56 = vadd.f32 %v754_v22, %v738_v12 }
 0x346   :  { %v772_v44 = vadd.f32 %v771_v24, %v755_v56 }
 0x348   :  { %v789_v13 = vadd.f32 %v788_v47, %v772_v44 }
 0x34a   :  { %v806_v48 = vadd.f32 %v805_v40, %v789_v13 }
 0x34c   :  { %842 = vmatpush.msrb.mxu1 %v806_v48 }
 0x34d   :  { %909 = vmatmul.msk.f32.vlgmr.msrb.gmra.mxu1 %vm263_vm2, %v807_v41 }
 0x355   :  { %910 = vmatmul.msk.f32.gmra.mxu1 %vm263_vm2, %v808_v28 }
 0x3ca   :  { %v844_v30 = vpop.f32.mrf.mxu1 }
 0x3cb   :  { %v845_v51 = vadd.f32 %v844_v30, %v814_v15 }
 0x3d2   :  { %v847_v33 = vpop.f32.mrf.mxu1 }
 0x3d3   :  { %v848_v27 = vadd.f32 %v847_v33, %v819_v50 }
 0x3d5   :  { %v851_v55 = vsel %vm850_vm6, %v848_v27, -inf }
 0x3d6   :  { %v852_v58 = vmax.f32 %v845_v51, %v851_v55 }
 0x3d8   :  { %v853_v59 = vrot.slane %v852_v58, 4 }
 0x3da   :  { %v854_v61 = vmax.f32 %v852_v58, %v853_v59 }
 0x3dc   :  { %v855_v62 = vrot.slane %v854_v61, 2 }
 0x3de   :  { %v856_v0 = vmax.f32 %v854_v61, %v855_v62 }
 0x3e0   :  { %v857_v1 = vrot.slane %v856_v0, 1 }
 0x3e2   :  { %v858_v2 = vmax.f32 %v856_v0, %v857_v1 }
 0x3e4   :  { %v859_v4 = vsub.f32 %v845_v51, %v858_v2  ;;  %v860_v5 = vsub.f32 %v848_v27, %v858_v2 }
 0x3e6   :  { %v861_v6 = vmul.f32 1.442695, %v859_v4  ;;  %v863_v8 = vmul.f32 1.442695, %v860_v5 }
 0x3e8   :  { %1047 = vpow2.f32 %v861_v6 }
 0x3e9   :  { %1049 = vpow2.f32 %v863_v8 }
 0x3ee   :  { %v1048_v9 = vpop.eup %1047 }
 0x3ef   :  { %v1050_v10 = vpop.eup %1049 }
 0x3f0   :  { %v865_v11 = vsel %vm850_vm6, %v1050_v10, 0.0 }
 0x3f1   :  { %v866_v14 = vadd.f32 %v1048_v9, %v865_v11 }
 0x3f3   :  { %v867_v16 = vrot.slane %v866_v14, 4 }
 0x3f5   :  { %v868_v57 = vadd.f32 %v867_v16, %v866_v14 }
 0x3f7   :  { %v869_v18 = vrot.slane %v868_v57, 2 }
 0x3f9   :  { %v870_v19 = vadd.f32 %v869_v18, %v868_v57 }
 0x3fb   :  { %v871_v60 = vrot.slane %v870_v19, 1 }
 0x3fd   :  { %v872_v21 = vadd.f32 %v871_v60, %v870_v19 }
 0x3ff   :  { %1051 = vlog2.f32 %v872_v21 }
 0x405   :  { %v1052_v25 = vpop.eup %1051 }
 0x406   :  { %v874_v26 = vmul.f32 0.6931472, %v1052_v25 }
 0x408   :  { %v875_v42 = vsub.f32 %v859_v4, %v874_v26  ;;  %v876_v46 = vsub.f32 %v860_v5, %v874_v26 }
 0x40a   :  { %877 = vst [vmem:[#allocation2] sm:$0xff] %v875_v42 }
 0x40b   :  { %878 = vst [vmem:[#allocation2 + $0x8] sm:$0x3] %v876_v46 }
 0x40c   :  { %891 = dma.vmem_to_hbm [thread:$0]  %s884_s16, 256, %s886_s19, [#allocation3], %s1081_s20, %s1081_s20, %s1082_s21  }
 0x40d   :  { %1077 = dma.done.wait [#allocation3], 256  }
 0x40e   :  { %1078 = vsyncadd [#allocation3], 4294967040 }
 0x40f   :  { %896 = vsyncpa [#allocation3], 1 }

</bundles_post_ra>
